<compile_context>
chip_gen: v6e
topology: v6e:2x2x1
jax: 0.10.0
libtpu: 0.0.40
codegen_flags: <defaults>
</compile_context>

<pallas_src>
import functools

import jax
import jax.numpy as jnp
from jax import lax
from jax.experimental import pallas as pl
from jax.experimental.pallas import tpu as pltpu


def _round_up(x, m):
    return (x + m - 1) // m * m


def _pad_to(a, shape):
    return jnp.pad(a, [(0, s - d) for d, s in zip(a.shape, shape)])


def _gru_decoder_kernel(
    z_ref,        # (bt, L)        f32
    w_emb_ref,    # (L, Ep)        bf16
    b_emb_ref,    # (1, Ep)        f32
    w_i_ref,      # (Ep, 3*Ep)     bf16  fused (r|z|n) input-gate weights
    b_i_ref,      # (1, 3*Ep)      f32   fused input biases with b_hr/b_hz folded in
    w_h_ref,      # (Ep, 3*Ep)     bf16  fused (r|z|n) hidden-gate weights (no bias)
    b_hn_ref,     # (1, Ep)        f32   hidden bias of n gate (must stay inside r*(...))
    w_out_ref,    # (Ep, Op)       bf16
    b_out_ref,    # (1, Op)        f32
    out_ref,      # (Sp, bt, Op)   f32   time-major output block for this batch tile
    hs_ref,       # VMEM scratch (Sp, bt, Ep) f32, time-major
    *,
    seq_len,
):
    bt = z_ref.shape[0]
    Ep = w_emb_ref.shape[1]
    Sp = hs_ref.shape[0]
    Op = w_out_ref.shape[1]

    # latent -> embedding (Linear); bf16 MXU inputs, f32 accumulation.
    emb = (
        jnp.dot(z_ref[...].astype(jnp.bfloat16), w_emb_ref[...],
                preferred_element_type=jnp.float32)
        + b_emb_ref[...]
    )  # (bt, Ep) f32

    # GRU input is `emb` at every timestep -> input-gate projections are loop-invariant.
    gx = (
        jnp.dot(emb.astype(jnp.bfloat16), w_i_ref[...],
                preferred_element_type=jnp.float32)
        + b_i_ref[...]
    )  # (bt, 3*Ep) f32
    gx_r = gx[:, 0:Ep]
    gx_z = gx[:, Ep:2 * Ep]
    gx_n = gx[:, 2 * Ep:3 * Ep]

    w_h = w_h_ref[...]                                    # bf16, loaded once
    b_hn = jnp.broadcast_to(b_hn_ref[...], (bt, Ep))      # hoisted: one broadcast, not seq_len

    # Zero only the padded timesteps (dead code when seq_len is already a multiple of 8).
    if Sp > seq_len:
        hs_ref[seq_len:, :, :] = jnp.zeros((Sp - seq_len, bt, Ep), hs_ref.dtype)

    h = jnp.zeros((bt, Ep), dtype=jnp.float32)
    # Fully unrolled: seq_len is small & static.
    # TODO(synk): for long seq_len switch to lax.fori_loop(..., unroll=4..8) with a
    #             pl.ds dynamic-index store into the time-major scratch to avoid vreg spills.
    for t in range(seq_len):
        # One fused MXU push per step: (bt, Ep) @ (Ep, 3*Ep), bf16 in / f32 out.
        gh = jnp.dot(h.astype(jnp.bfloat16), w_h, preferred_element_type=jnp.float32)
        r = jax.nn.sigmoid(gx_r + gh[:, 0:Ep])
        zg = jax.nn.sigmoid(gx_z + gh[:, Ep:2 * Ep])
        n = jnp.tanh(gx_n + r * (gh[:, 2 * Ep:3 * Ep] + b_hn))
        h = (1.0 - zg) * n + zg * h
        hs_ref[t] = h                                     # full unmasked (bt, Ep) tile store

    # Output projection hoisted out of the recurrence: one large lane-dense matmul + store.
    hs = hs_ref[...].astype(jnp.bfloat16).reshape(Sp * bt, Ep)
    out = (
        jnp.dot(hs, w_out_ref[...], preferred_element_type=jnp.float32)
        + b_out_ref[...]
    )
    out_ref[...] = out.reshape(Sp, bt, Op)


def prepare_params(p):
    """Fuse GRU gate weights, zero-pad to TPU tiles, cast MXU weights to bf16.

    Call once, off the hot path. Biases stay f32 (added after the f32-accumulated matmuls).
    """
    L, E = p["w_emb"].shape
    O = p["w_out"].shape[1]
    Ep = _round_up(E, 128)
    Op = _round_up(O, 128)

    padw = lambda w: _pad_to(w, (Ep, Ep))
    padb = lambda b: _pad_to(b, (1, Ep))
    bf = lambda a: a.astype(jnp.bfloat16)

    return {
        "w_emb": bf(_pad_to(p["w_emb"], (L, Ep))),
        "b_emb": padb(p["b_emb"]),
        # fused (r|z|n); b_hr/b_hz folded into the input biases (exact), b_hn kept separate
        "w_i": bf(jnp.concatenate([padw(p["w_ir"]), padw(p["w_iz"]), padw(p["w_in"])], axis=1)),
        "b_i": jnp.concatenate(
            [padb(p["b_ir"] + p["b_hr"]), padb(p["b_iz"] + p["b_hz"]), padb(p["b_in"])], axis=1
        ),
        "w_h": bf(jnp.concatenate([padw(p["w_hr"]), padw(p["w_hz"]), padw(p["w_hn"])], axis=1)),
        "b_hn": padb(p["b_hn"]),
        "w_out": bf(_pad_to(p["w_out"], (Ep, Op))),
        "b_out": _pad_to(p["b_out"], (1, Op)),
    }


def transformer_vae_decoder(z, prepared, *, seq_len, output_dim):
    """Pallas forward pass. Returns (B, seq_len, output_dim) in f32."""
    B, L = z.shape
    Ep = prepared["w_emb"].shape[1]
    Op = prepared["w_out"].shape[1]

    # Batch tile: as large as the deployment batch allows (amortizes MXU fill/drain on the
    # non-recurrent matmuls), capped at 256 rows; must be a multiple of 8 and divide Bp.
    bt = min(_round_up(B, 8), 256)
    Bp = _round_up(B, bt)
    Sp = _round_up(seq_len, 8)

    z_p = _pad_to(z, (Bp, L))

    args = (
        z_p,
        prepared["w_emb"], prepared["b_emb"],
        prepared["w_i"], prepared["b_i"],
        prepared["w_h"], prepared["b_hn"],
        prepared["w_out"], prepared["b_out"],
    )

    # Constant index maps keep all weights VMEM-resident across the batch grid (no re-DMA);
    # z / out / hidden-scratch are per-batch-tile, so VMEM scales with bt*Sp, not Bp*Sp.
    in_specs = [
        pl.BlockSpec((bt, L), lambda i: (i, 0)),            # z
        pl.BlockSpec((L, Ep), lambda i: (0, 0)),            # w_emb
        pl.BlockSpec((1, Ep), lambda i: (0, 0)),            # b_emb
        pl.BlockSpec((Ep, 3 * Ep), lambda i: (0, 0)),       # w_i (fused)
        pl.BlockSpec((1, 3 * Ep), lambda i: (0, 0)),        # b_i (fused)
        pl.BlockSpec((Ep, 3 * Ep), lambda i: (0, 0)),       # w_h (fused)
        pl.BlockSpec((1, Ep), lambda i: (0, 0)),            # b_hn
        pl.BlockSpec((Ep, Op), lambda i: (0, 0)),           # w_out
        pl.BlockSpec((1, Op), lambda i: (0, 0)),            # b_out
    ]
    out_specs = pl.BlockSpec((Sp, bt, Op), lambda i: (0, i, 0))  # time-major output slab

    out_tm = pl.pallas_call(
        functools.partial(_gru_decoder_kernel, seq_len=seq_len),
        out_shape=jax.ShapeDtypeStruct((Sp, Bp, Op), jnp.float32),
        grid=(Bp // bt,),
        in_specs=in_specs,
        out_specs=out_specs,
        scratch_shapes=[pltpu.VMEM((Sp, bt, Ep), jnp.float32)],
        compiler_params=pltpu.CompilerParams(
            # Batch axis is fully independent -> megacore-shardable (2 TCs on v7x).
            dimension_semantics=("parallel",),
            # bf16 weights + per-tile scratch stay well inside this on all gens; 48 MiB keeps
            # headroom on v7x (64 MiB physical) while lifting v5e's 16 MiB default.
            # TODO(synk): for very large E, stream w_i/w_out per N-tile instead of resident.
            vmem_limit_bytes=48 * 1024 * 1024,
        ),
    )(*args)

    # Time-major (Sp, Bp, Op) -> batch-major; tiny reorder outside the kernel; strip padding.
    out = jnp.transpose(out_tm, (1, 0, 2))
    return out[:B, :seq_len, :output_dim]


def init_params(key, latent_dim, output_dim, emb_dim):
    """Deterministic synthetic parameters (uniform, PyTorch-ish scaling)."""
    ks = jax.random.split(key, 16)

    def u(k, shape, fan_in):
        bound = 1.0 / jnp.sqrt(jnp.float32(fan_in))
        return jax.random.uniform(k, shape, jnp.float32, -bound, bound)

    E = emb_dim
    return {
        # latent_to_emb
        "w_emb": u(ks[0], (latent_dim, E), latent_dim),
        "b_emb": u(ks[1], (1, E), latent_dim),
        # GRU weight_ih_l0 split (r, z, n), transposed to (E, E)
        "w_ir": u(ks[2], (E, E), E),
        "w_iz": u(ks[3], (E, E), E),
        "w_in": u(ks[4], (E, E), E),
        "b_ir": u(ks[5], (1, E), E),
        "b_iz": u(ks[6], (1, E), E),
        "b_in": u(ks[7], (1, E), E),
        # GRU weight_hh_l0 split (r, z, n), transposed to (E, E)
        "w_hr": u(ks[8], (E, E), E),
        "w_hz": u(ks[9], (E, E), E),
        "w_hn": u(ks[10], (E, E), E),
        "b_hr": u(ks[11], (1, E), E),
        "b_hz": u(ks[12], (1, E), E),
        "b_hn": u(ks[13], (1, E), E),
        # output_layer
        "w_out": u(ks[14], (E, output_dim), E),
        "b_out": u(ks[15], (1, output_dim), E),
    }


def reference_forward(z, p, seq_len):
    """Plain-JAX f32 reference replicating torch semantics, for validation."""
    emb = z @ p["w_emb"] + p["b_emb"][0]  # (B, E)
    B, E = emb.shape

    def step(h, _):
        r = jax.nn.sigmoid(emb @ p["w_ir"] + p["b_ir"][0] + h @ p["w_hr"] + p["b_hr"][0])
        zg = jax.nn.sigmoid(emb @ p["w_iz"] + p["b_iz"][0] + h @ p["w_hz"] + p["b_hz"][0])
        n = jnp.tanh(emb @ p["w_in"] + p["b_in"][0] + r * (h @ p["w_hn"] + p["b_hn"][0]))
        h_new = (1.0 - zg) * n + zg * h
        return h_new, h_new

    h0 = jnp.zeros((B, E), jnp.float32)
    _, hs = lax.scan(step, h0, None, length=seq_len)  # (S, B, E)
    out = hs @ p["w_out"] + p["b_out"][0]             # (S, B, O)
    return jnp.transpose(out, (1, 0, 2))              # (B, S, O)


if __name__ == "__main__":
    # small shapes consistent with the module's forward
    batch, latent_dim, output_dim, emb_dim, seq_len = 2, 8, 4, 32, 8

    key = jax.random.PRNGKey(0)
    k_param, k_z = jax.random.split(key)
    params = init_params(k_param, latent_dim, output_dim, emb_dim)
    z = jax.random.normal(k_z, (batch, latent_dim), jnp.float32)

    prepared = prepare_params(params)   # one-time weight fusion + tile padding + bf16 cast

    fwd = jax.jit(
        functools.partial(transformer_vae_decoder, seq_len=seq_len, output_dim=output_dim)
    )
    out = jax.block_until_ready(fwd(z, prepared))

    ref = reference_forward(z, params, seq_len)
    assert out.shape == (batch, seq_len, output_dim), out.shape
    # bf16 MXU operands with f32 accumulation -> looser tolerance vs the pure-f32 reference.
    assert jnp.allclose(out, ref, atol=5e-2, rtol=5e-2), float(jnp.max(jnp.abs(out - ref)))

    print("KERNEL_OK")
</pallas_src>

<mosaic_0001>
module attributes {stable_mosaic.version = 11 : i64} {
  func.func @_gru_decoder_kernel(%arg0: i32, %arg1: memref<8x8xf32, #tpu.memory_space<vmem>>, %arg2: memref<8x128xbf16, #tpu.memory_space<vmem>>, %arg3: memref<1x128xf32, #tpu.memory_space<vmem>>, %arg4: memref<128x384xbf16, #tpu.memory_space<vmem>>, %arg5: memref<1x384xf32, #tpu.memory_space<vmem>>, %arg6: memref<128x384xbf16, #tpu.memory_space<vmem>>, %arg7: memref<1x128xf32, #tpu.memory_space<vmem>>, %arg8: memref<128x128xbf16, #tpu.memory_space<vmem>>, %arg9: memref<1x128xf32, #tpu.memory_space<vmem>>, %arg10: memref<8x8x128xf32, #tpu.memory_space<vmem>>, %arg11: memref<8x8x128xf32, #tpu.memory_space<vmem>>) attributes {dimension_semantics = [#tpu.dimension_semantics<parallel>], iteration_bounds = array<i64: 1>, scalar_prefetch = 0 : i64, scratch_operands = 1 : i64, tpu.core_type = #tpu.core_type<tc>, window_params = [{transform_indices = @transform_0, window_bounds = array<i64: 8, 8>}, {pipeline_mode = #tpu.pipeline_mode<synchronous>, transform_indices = @transform_1, window_bounds = array<i64: 8, 128>}, {pipeline_mode = #tpu.pipeline_mode<synchronous>, transform_indices = @transform_2, window_bounds = array<i64: 1, 128>}, {pipeline_mode = #tpu.pipeline_mode<synchronous>, transform_indices = @transform_3, window_bounds = array<i64: 128, 384>}, {pipeline_mode = #tpu.pipeline_mode<synchronous>, transform_indices = @transform_4, window_bounds = array<i64: 1, 384>}, {pipeline_mode = #tpu.pipeline_mode<synchronous>, transform_indices = @transform_5, window_bounds = array<i64: 128, 384>}, {pipeline_mode = #tpu.pipeline_mode<synchronous>, transform_indices = @transform_6, window_bounds = array<i64: 1, 128>}, {pipeline_mode = #tpu.pipeline_mode<synchronous>, transform_indices = @transform_7, window_bounds = array<i64: 128, 128>}, {pipeline_mode = #tpu.pipeline_mode<synchronous>, transform_indices = @transform_8, window_bounds = array<i64: 1, 128>}, {transform_indices = @transform_9, window_bounds = array<i64: 8, 8, 128>}]} {
    %c0 = arith.constant 0 : index
    %c0_0 = arith.constant 0 : index
    %0 = vector.load %arg1[%c0, %c0_0] : memref<8x8xf32, #tpu.memory_space<vmem>>, vector<8x8xf32>
    %1 = arith.truncf %0 : vector<8x8xf32> to vector<8x8xbf16>
    %c0_1 = arith.constant 0 : index
    %c0_2 = arith.constant 0 : index
    %2 = vector.load %arg2[%c0_1, %c0_2] : memref<8x128xbf16, #tpu.memory_space<vmem>>, vector<8x128xbf16>
    %cst = arith.constant dense<0.000000e+00> : vector<8x128xf32>
    %3 = tpu.matmul %1, %2, %cst {dimension_numbers = #tpu.dot_dimension_numbers<[1], [0], [0], [1], [0, 0, 1, 1], [], []>} : vector<8x8xbf16>, vector<8x128xbf16>, vector<8x128xf32> -> vector<8x128xf32>
    %c0_3 = arith.constant 0 : index
    %c0_4 = arith.constant 0 : index
    %4 = vector.load %arg3[%c0_3, %c0_4] : memref<1x128xf32, #tpu.memory_space<vmem>>, vector<1x128xf32>
    %5 = vector.broadcast %4 : vector<1x128xf32> to vector<8x128xf32>
    %6 = arith.addf %3, %5 : vector<8x128xf32>
    %7 = arith.truncf %6 : vector<8x128xf32> to vector<8x128xbf16>
    %c0_5 = arith.constant 0 : index
    %c0_6 = arith.constant 0 : index
    %8 = vector.load %arg4[%c0_5, %c0_6] : memref<128x384xbf16, #tpu.memory_space<vmem>>, vector<128x384xbf16>
    %cst_7 = arith.constant dense<0.000000e+00> : vector<8x384xf32>
    %9 = tpu.matmul %7, %8, %cst_7 {dimension_numbers = #tpu.dot_dimension_numbers<[1], [0], [0], [1], [0, 0, 1, 1], [], []>} : vector<8x128xbf16>, vector<128x384xbf16>, vector<8x384xf32> -> vector<8x384xf32>
    %c0_8 = arith.constant 0 : index
    %c0_9 = arith.constant 0 : index
    %10 = vector.load %arg5[%c0_8, %c0_9] : memref<1x384xf32, #tpu.memory_space<vmem>>, vector<1x384xf32>
    %11 = vector.broadcast %10 : vector<1x384xf32> to vector<8x384xf32>
    %12 = arith.addf %9, %11 : vector<8x384xf32>
    %13 = vector.extract_strided_slice %12 {offsets = [0, 0], sizes = [8, 128], strides = [1, 1]} : vector<8x384xf32> to vector<8x128xf32>
    %14 = vector.extract_strided_slice %12 {offsets = [0, 128], sizes = [8, 128], strides = [1, 1]} : vector<8x384xf32> to vector<8x128xf32>
    %15 = vector.extract_strided_slice %12 {offsets = [0, 256], sizes = [8, 128], strides = [1, 1]} : vector<8x384xf32> to vector<8x128xf32>
    %c0_10 = arith.constant 0 : index
    %c0_11 = arith.constant 0 : index
    %16 = vector.load %arg6[%c0_10, %c0_11] : memref<128x384xbf16, #tpu.memory_space<vmem>>, vector<128x384xbf16>
    %c0_12 = arith.constant 0 : index
    %c0_13 = arith.constant 0 : index
    %17 = vector.load %arg7[%c0_12, %c0_13] : memref<1x128xf32, #tpu.memory_space<vmem>>, vector<1x128xf32>
    %18 = vector.shape_cast %17 : vector<1x128xf32> to vector<1x128xf32>
    %19 = vector.broadcast %18 : vector<1x128xf32> to vector<8x128xf32>
    %cst_14 = arith.constant 0.000000e+00 : f32
    %20 = vector.broadcast %cst_14 : f32 to vector<8x128xf32>
    %21 = arith.truncf %20 : vector<8x128xf32> to vector<8x128xbf16>
    %cst_15 = arith.constant dense<0.000000e+00> : vector<8x384xf32>
    %22 = tpu.matmul %21, %16, %cst_15 {dimension_numbers = #tpu.dot_dimension_numbers<[1], [0], [0], [1], [0, 0, 1, 1], [], []>} : vector<8x128xbf16>, vector<128x384xbf16>, vector<8x384xf32> -> vector<8x384xf32>
    %23 = vector.extract_strided_slice %22 {offsets = [0, 0], sizes = [8, 128], strides = [1, 1]} : vector<8x384xf32> to vector<8x128xf32>
    %24 = arith.addf %13, %23 : vector<8x128xf32>
    %25 = arith.negf %24 : vector<8x128xf32>
    %26 = math.exp %25 : vector<8x128xf32>
    %cst_16 = arith.constant 1.000000e+00 : f32
    %27 = vector.broadcast %cst_16 : f32 to vector<8x128xf32>
    %28 = arith.addf %27, %26 : vector<8x128xf32>
    %29 = arith.divf %27, %28 : vector<8x128xf32>
    %30 = vector.extract_strided_slice %22 {offsets = [0, 128], sizes = [8, 128], strides = [1, 1]} : vector<8x384xf32> to vector<8x128xf32>
    %31 = arith.addf %14, %30 : vector<8x128xf32>
    %32 = arith.negf %31 : vector<8x128xf32>
    %33 = math.exp %32 : vector<8x128xf32>
    %cst_17 = arith.constant 1.000000e+00 : f32
    %34 = vector.broadcast %cst_17 : f32 to vector<8x128xf32>
    %35 = arith.addf %34, %33 : vector<8x128xf32>
    %36 = arith.divf %34, %35 : vector<8x128xf32>
    %37 = vector.extract_strided_slice %22 {offsets = [0, 256], sizes = [8, 128], strides = [1, 1]} : vector<8x384xf32> to vector<8x128xf32>
    %38 = arith.addf %37, %19 : vector<8x128xf32>
    %39 = arith.mulf %29, %38 : vector<8x128xf32>
    %40 = arith.addf %15, %39 : vector<8x128xf32>
    %41 = math.tanh %40 : vector<8x128xf32>
    %cst_18 = arith.constant 1.000000e+00 : f32
    %42 = vector.broadcast %cst_18 : f32 to vector<8x128xf32>
    %43 = arith.subf %42, %36 : vector<8x128xf32>
    %44 = arith.mulf %43, %41 : vector<8x128xf32>
    %45 = arith.mulf %36, %20 : vector<8x128xf32>
    %46 = arith.addf %44, %45 : vector<8x128xf32>
    %c0_19 = arith.constant 0 : index
    %c0_20 = arith.constant 0 : index
    %c0_21 = arith.constant 0 : index
    %47 = vector.load %arg11[%c0_19, %c0_20, %c0_21] : memref<8x8x128xf32, #tpu.memory_space<vmem>>, vector<1x8x128xf32>
    %48 = vector.shape_cast %47 : vector<1x8x128xf32> to vector<8x128xf32>
    %49 = vector.shape_cast %46 : vector<8x128xf32> to vector<1x8x128xf32>
    tpu.vector_store %arg11[%c0_19, %c0_20, %c0_21], %49 {strides = array<i32>} : memref<8x8x128xf32, #tpu.memory_space<vmem>>, vector<1x8x128xf32>,
    %50 = arith.truncf %46 : vector<8x128xf32> to vector<8x128xbf16>
    %cst_22 = arith.constant dense<0.000000e+00> : vector<8x384xf32>
    %51 = tpu.matmul %50, %16, %cst_22 {dimension_numbers = #tpu.dot_dimension_numbers<[1], [0], [0], [1], [0, 0, 1, 1], [], []>} : vector<8x128xbf16>, vector<128x384xbf16>, vector<8x384xf32> -> vector<8x384xf32>
    %52 = vector.extract_strided_slice %51 {offsets = [0, 0], sizes = [8, 128], strides = [1, 1]} : vector<8x384xf32> to vector<8x128xf32>
    %53 = arith.addf %13, %52 : vector<8x128xf32>
    %54 = arith.negf %53 : vector<8x128xf32>
    %55 = math.exp %54 : vector<8x128xf32>
    %cst_23 = arith.constant 1.000000e+00 : f32
    %56 = vector.broadcast %cst_23 : f32 to vector<8x128xf32>
    %57 = arith.addf %56, %55 : vector<8x128xf32>
    %58 = arith.divf %56, %57 : vector<8x128xf32>
    %59 = vector.extract_strided_slice %51 {offsets = [0, 128], sizes = [8, 128], strides = [1, 1]} : vector<8x384xf32> to vector<8x128xf32>
    %60 = arith.addf %14, %59 : vector<8x128xf32>
    %61 = arith.negf %60 : vector<8x128xf32>
    %62 = math.exp %61 : vector<8x128xf32>
    %cst_24 = arith.constant 1.000000e+00 : f32
    %63 = vector.broadcast %cst_24 : f32 to vector<8x128xf32>
    %64 = arith.addf %63, %62 : vector<8x128xf32>
    %65 = arith.divf %63, %64 : vector<8x128xf32>
    %66 = vector.extract_strided_slice %51 {offsets = [0, 256], sizes = [8, 128], strides = [1, 1]} : vector<8x384xf32> to vector<8x128xf32>
    %67 = arith.addf %66, %19 : vector<8x128xf32>
    %68 = arith.mulf %58, %67 : vector<8x128xf32>
    %69 = arith.addf %15, %68 : vector<8x128xf32>
    %70 = math.tanh %69 : vector<8x128xf32>
    %cst_25 = arith.constant 1.000000e+00 : f32
    %71 = vector.broadcast %cst_25 : f32 to vector<8x128xf32>
    %72 = arith.subf %71, %65 : vector<8x128xf32>
    %73 = arith.mulf %72, %70 : vector<8x128xf32>
    %74 = arith.mulf %65, %46 : vector<8x128xf32>
    %75 = arith.addf %73, %74 : vector<8x128xf32>
    %c1 = arith.constant 1 : index
    %c0_26 = arith.constant 0 : index
    %c0_27 = arith.constant 0 : index
    %76 = vector.load %arg11[%c1, %c0_26, %c0_27] : memref<8x8x128xf32, #tpu.memory_space<vmem>>, vector<1x8x128xf32>
    %77 = vector.shape_cast %76 : vector<1x8x128xf32> to vector<8x128xf32>
    %78 = vector.shape_cast %75 : vector<8x128xf32> to vector<1x8x128xf32>
    tpu.vector_store %arg11[%c1, %c0_26, %c0_27], %78 {strides = array<i32>} : memref<8x8x128xf32, #tpu.memory_space<vmem>>, vector<1x8x128xf32>,
    %79 = arith.truncf %75 : vector<8x128xf32> to vector<8x128xbf16>
    %cst_28 = arith.constant dense<0.000000e+00> : vector<8x384xf32>
    %80 = tpu.matmul %79, %16, %cst_28 {dimension_numbers = #tpu.dot_dimension_numbers<[1], [0], [0], [1], [0, 0, 1, 1], [], []>} : vector<8x128xbf16>, vector<128x384xbf16>, vector<8x384xf32> -> vector<8x384xf32>
    %81 = vector.extract_strided_slice %80 {offsets = [0, 0], sizes = [8, 128], strides = [1, 1]} : vector<8x384xf32> to vector<8x128xf32>
    %82 = arith.addf %13, %81 : vector<8x128xf32>
    %83 = arith.negf %82 : vector<8x128xf32>
    %84 = math.exp %83 : vector<8x128xf32>
    %cst_29 = arith.constant 1.000000e+00 : f32
    %85 = vector.broadcast %cst_29 : f32 to vector<8x128xf32>
    %86 = arith.addf %85, %84 : vector<8x128xf32>
    %87 = arith.divf %85, %86 : vector<8x128xf32>
    %88 = vector.extract_strided_slice %80 {offsets = [0, 128], sizes = [8, 128], strides = [1, 1]} : vector<8x384xf32> to vector<8x128xf32>
    %89 = arith.addf %14, %88 : vector<8x128xf32>
    %90 = arith.negf %89 : vector<8x128xf32>
    %91 = math.exp %90 : vector<8x128xf32>
    %cst_30 = arith.constant 1.000000e+00 : f32
    %92 = vector.broadcast %cst_30 : f32 to vector<8x128xf32>
    %93 = arith.addf %92, %91 : vector<8x128xf32>
    %94 = arith.divf %92, %93 : vector<8x128xf32>
    %95 = vector.extract_strided_slice %80 {offsets = [0, 256], sizes = [8, 128], strides = [1, 1]} : vector<8x384xf32> to vector<8x128xf32>
    %96 = arith.addf %95, %19 : vector<8x128xf32>
    %97 = arith.mulf %87, %96 : vector<8x128xf32>
    %98 = arith.addf %15, %97 : vector<8x128xf32>
    %99 = math.tanh %98 : vector<8x128xf32>
    %cst_31 = arith.constant 1.000000e+00 : f32
    %100 = vector.broadcast %cst_31 : f32 to vector<8x128xf32>
    %101 = arith.subf %100, %94 : vector<8x128xf32>
    %102 = arith.mulf %101, %99 : vector<8x128xf32>
    %103 = arith.mulf %94, %75 : vector<8x128xf32>
    %104 = arith.addf %102, %103 : vector<8x128xf32>
    %c2 = arith.constant 2 : index
    %c0_32 = arith.constant 0 : index
    %c0_33 = arith.constant 0 : index
    %105 = vector.load %arg11[%c2, %c0_32, %c0_33] : memref<8x8x128xf32, #tpu.memory_space<vmem>>, vector<1x8x128xf32>
    %106 = vector.shape_cast %105 : vector<1x8x128xf32> to vector<8x128xf32>
    %107 = vector.shape_cast %104 : vector<8x128xf32> to vector<1x8x128xf32>
    tpu.vector_store %arg11[%c2, %c0_32, %c0_33], %107 {strides = array<i32>} : memref<8x8x128xf32, #tpu.memory_space<vmem>>, vector<1x8x128xf32>,
    %108 = arith.truncf %104 : vector<8x128xf32> to vector<8x128xbf16>
    %cst_34 = arith.constant dense<0.000000e+00> : vector<8x384xf32>
    %109 = tpu.matmul %108, %16, %cst_34 {dimension_numbers = #tpu.dot_dimension_numbers<[1], [0], [0], [1], [0, 0, 1, 1], [], []>} : vector<8x128xbf16>, vector<128x384xbf16>, vector<8x384xf32> -> vector<8x384xf32>
    %110 = vector.extract_strided_slice %109 {offsets = [0, 0], sizes = [8, 128], strides = [1, 1]} : vector<8x384xf32> to vector<8x128xf32>
    %111 = arith.addf %13, %110 : vector<8x128xf32>
    %112 = arith.negf %111 : vector<8x128xf32>
    %113 = math.exp %112 : vector<8x128xf32>
    %cst_35 = arith.constant 1.000000e+00 : f32
    %114 = vector.broadcast %cst_35 : f32 to vector<8x128xf32>
    %115 = arith.addf %114, %113 : vector<8x128xf32>
    %116 = arith.divf %114, %115 : vector<8x128xf32>
    %117 = vector.extract_strided_slice %109 {offsets = [0, 128], sizes = [8, 128], strides = [1, 1]} : vector<8x384xf32> to vector<8x128xf32>
    %118 = arith.addf %14, %117 : vector<8x128xf32>
    %119 = arith.negf %118 : vector<8x128xf32>
    %120 = math.exp %119 : vector<8x128xf32>
    %cst_36 = arith.constant 1.000000e+00 : f32
    %121 = vector.broadcast %cst_36 : f32 to vector<8x128xf32>
    %122 = arith.addf %121, %120 : vector<8x128xf32>
    %123 = arith.divf %121, %122 : vector<8x128xf32>
    %124 = vector.extract_strided_slice %109 {offsets = [0, 256], sizes = [8, 128], strides = [1, 1]} : vector<8x384xf32> to vector<8x128xf32>
    %125 = arith.addf %124, %19 : vector<8x128xf32>
    %126 = arith.mulf %116, %125 : vector<8x128xf32>
    %127 = arith.addf %15, %126 : vector<8x128xf32>
    %128 = math.tanh %127 : vector<8x128xf32>
    %cst_37 = arith.constant 1.000000e+00 : f32
    %129 = vector.broadcast %cst_37 : f32 to vector<8x128xf32>
    %130 = arith.subf %129, %123 : vector<8x128xf32>
    %131 = arith.mulf %130, %128 : vector<8x128xf32>
    %132 = arith.mulf %123, %104 : vector<8x128xf32>
    %133 = arith.addf %131, %132 : vector<8x128xf32>
    %c3 = arith.constant 3 : index
    %c0_38 = arith.constant 0 : index
    %c0_39 = arith.constant 0 : index
    %134 = vector.load %arg11[%c3, %c0_38, %c0_39] : memref<8x8x128xf32, #tpu.memory_space<vmem>>, vector<1x8x128xf32>
    %135 = vector.shape_cast %134 : vector<1x8x128xf32> to vector<8x128xf32>
    %136 = vector.shape_cast %133 : vector<8x128xf32> to vector<1x8x128xf32>
    tpu.vector_store %arg11[%c3, %c0_38, %c0_39], %136 {strides = array<i32>} : memref<8x8x128xf32, #tpu.memory_space<vmem>>, vector<1x8x128xf32>,
    %137 = arith.truncf %133 : vector<8x128xf32> to vector<8x128xbf16>
    %cst_40 = arith.constant dense<0.000000e+00> : vector<8x384xf32>
    %138 = tpu.matmul %137, %16, %cst_40 {dimension_numbers = #tpu.dot_dimension_numbers<[1], [0], [0], [1], [0, 0, 1, 1], [], []>} : vector<8x128xbf16>, vector<128x384xbf16>, vector<8x384xf32> -> vector<8x384xf32>
    %139 = vector.extract_strided_slice %138 {offsets = [0, 0], sizes = [8, 128], strides = [1, 1]} : vector<8x384xf32> to vector<8x128xf32>
    %140 = arith.addf %13, %139 : vector<8x128xf32>
    %141 = arith.negf %140 : vector<8x128xf32>
    %142 = math.exp %141 : vector<8x128xf32>
    %cst_41 = arith.constant 1.000000e+00 : f32
    %143 = vector.broadcast %cst_41 : f32 to vector<8x128xf32>
    %144 = arith.addf %143, %142 : vector<8x128xf32>
    %145 = arith.divf %143, %144 : vector<8x128xf32>
    %146 = vector.extract_strided_slice %138 {offsets = [0, 128], sizes = [8, 128], strides = [1, 1]} : vector<8x384xf32> to vector<8x128xf32>
    %147 = arith.addf %14, %146 : vector<8x128xf32>
    %148 = arith.negf %147 : vector<8x128xf32>
    %149 = math.exp %148 : vector<8x128xf32>
    %cst_42 = arith.constant 1.000000e+00 : f32
    %150 = vector.broadcast %cst_42 : f32 to vector<8x128xf32>
    %151 = arith.addf %150, %149 : vector<8x128xf32>
    %152 = arith.divf %150, %151 : vector<8x128xf32>
    %153 = vector.extract_strided_slice %138 {offsets = [0, 256], sizes = [8, 128], strides = [1, 1]} : vector<8x384xf32> to vector<8x128xf32>
    %154 = arith.addf %153, %19 : vector<8x128xf32>
    %155 = arith.mulf %145, %154 : vector<8x128xf32>
    %156 = arith.addf %15, %155 : vector<8x128xf32>
    %157 = math.tanh %156 : vector<8x128xf32>
    %cst_43 = arith.constant 1.000000e+00 : f32
    %158 = vector.broadcast %cst_43 : f32 to vector<8x128xf32>
    %159 = arith.subf %158, %152 : vector<8x128xf32>
    %160 = arith.mulf %159, %157 : vector<8x128xf32>
    %161 = arith.mulf %152, %133 : vector<8x128xf32>
    %162 = arith.addf %160, %161 : vector<8x128xf32>
    %c4 = arith.constant 4 : index
    %c0_44 = arith.constant 0 : index
    %c0_45 = arith.constant 0 : index
    %163 = vector.load %arg11[%c4, %c0_44, %c0_45] : memref<8x8x128xf32, #tpu.memory_space<vmem>>, vector<1x8x128xf32>
    %164 = vector.shape_cast %163 : vector<1x8x128xf32> to vector<8x128xf32>
    %165 = vector.shape_cast %162 : vector<8x128xf32> to vector<1x8x128xf32>
    tpu.vector_store %arg11[%c4, %c0_44, %c0_45], %165 {strides = array<i32>} : memref<8x8x128xf32, #tpu.memory_space<vmem>>, vector<1x8x128xf32>,
    %166 = arith.truncf %162 : vector<8x128xf32> to vector<8x128xbf16>
    %cst_46 = arith.constant dense<0.000000e+00> : vector<8x384xf32>
    %167 = tpu.matmul %166, %16, %cst_46 {dimension_numbers = #tpu.dot_dimension_numbers<[1], [0], [0], [1], [0, 0, 1, 1], [], []>} : vector<8x128xbf16>, vector<128x384xbf16>, vector<8x384xf32> -> vector<8x384xf32>
    %168 = vector.extract_strided_slice %167 {offsets = [0, 0], sizes = [8, 128], strides = [1, 1]} : vector<8x384xf32> to vector<8x128xf32>
    %169 = arith.addf %13, %168 : vector<8x128xf32>
    %170 = arith.negf %169 : vector<8x128xf32>
    %171 = math.exp %170 : vector<8x128xf32>
    %cst_47 = arith.constant 1.000000e+00 : f32
    %172 = vector.broadcast %cst_47 : f32 to vector<8x128xf32>
    %173 = arith.addf %172, %171 : vector<8x128xf32>
    %174 = arith.divf %172, %173 : vector<8x128xf32>
    %175 = vector.extract_strided_slice %167 {offsets = [0, 128], sizes = [8, 128], strides = [1, 1]} : vector<8x384xf32> to vector<8x128xf32>
    %176 = arith.addf %14, %175 : vector<8x128xf32>
    %177 = arith.negf %176 : vector<8x128xf32>
    %178 = math.exp %177 : vector<8x128xf32>
    %cst_48 = arith.constant 1.000000e+00 : f32
    %179 = vector.broadcast %cst_48 : f32 to vector<8x128xf32>
    %180 = arith.addf %179, %178 : vector<8x128xf32>
    %181 = arith.divf %179, %180 : vector<8x128xf32>
    %182 = vector.extract_strided_slice %167 {offsets = [0, 256], sizes = [8, 128], strides = [1, 1]} : vector<8x384xf32> to vector<8x128xf32>
    %183 = arith.addf %182, %19 : vector<8x128xf32>
    %184 = arith.mulf %174, %183 : vector<8x128xf32>
    %185 = arith.addf %15, %184 : vector<8x128xf32>
    %186 = math.tanh %185 : vector<8x128xf32>
    %cst_49 = arith.constant 1.000000e+00 : f32
    %187 = vector.broadcast %cst_49 : f32 to vector<8x128xf32>
    %188 = arith.subf %187, %181 : vector<8x128xf32>
    %189 = arith.mulf %188, %186 : vector<8x128xf32>
    %190 = arith.mulf %181, %162 : vector<8x128xf32>
    %191 = arith.addf %189, %190 : vector<8x128xf32>
    %c5 = arith.constant 5 : index
    %c0_50 = arith.constant 0 : index
    %c0_51 = arith.constant 0 : index
    %192 = vector.load %arg11[%c5, %c0_50, %c0_51] : memref<8x8x128xf32, #tpu.memory_space<vmem>>, vector<1x8x128xf32>
    %193 = vector.shape_cast %192 : vector<1x8x128xf32> to vector<8x128xf32>
    %194 = vector.shape_cast %191 : vector<8x128xf32> to vector<1x8x128xf32>
    tpu.vector_store %arg11[%c5, %c0_50, %c0_51], %194 {strides = array<i32>} : memref<8x8x128xf32, #tpu.memory_space<vmem>>, vector<1x8x128xf32>,
    %195 = arith.truncf %191 : vector<8x128xf32> to vector<8x128xbf16>
    %cst_52 = arith.constant dense<0.000000e+00> : vector<8x384xf32>
    %196 = tpu.matmul %195, %16, %cst_52 {dimension_numbers = #tpu.dot_dimension_numbers<[1], [0], [0], [1], [0, 0, 1, 1], [], []>} : vector<8x128xbf16>, vector<128x384xbf16>, vector<8x384xf32> -> vector<8x384xf32>
    %197 = vector.extract_strided_slice %196 {offsets = [0, 0], sizes = [8, 128], strides = [1, 1]} : vector<8x384xf32> to vector<8x128xf32>
    %198 = arith.addf %13, %197 : vector<8x128xf32>
    %199 = arith.negf %198 : vector<8x128xf32>
    %200 = math.exp %199 : vector<8x128xf32>
    %cst_53 = arith.constant 1.000000e+00 : f32
    %201 = vector.broadcast %cst_53 : f32 to vector<8x128xf32>
    %202 = arith.addf %201, %200 : vector<8x128xf32>
    %203 = arith.divf %201, %202 : vector<8x128xf32>
    %204 = vector.extract_strided_slice %196 {offsets = [0, 128], sizes = [8, 128], strides = [1, 1]} : vector<8x384xf32> to vector<8x128xf32>
    %205 = arith.addf %14, %204 : vector<8x128xf32>
    %206 = arith.negf %205 : vector<8x128xf32>
    %207 = math.exp %206 : vector<8x128xf32>
    %cst_54 = arith.constant 1.000000e+00 : f32
    %208 = vector.broadcast %cst_54 : f32 to vector<8x128xf32>
    %209 = arith.addf %208, %207 : vector<8x128xf32>
    %210 = arith.divf %208, %209 : vector<8x128xf32>
    %211 = vector.extract_strided_slice %196 {offsets = [0, 256], sizes = [8, 128], strides = [1, 1]} : vector<8x384xf32> to vector<8x128xf32>
    %212 = arith.addf %211, %19 : vector<8x128xf32>
    %213 = arith.mulf %203, %212 : vector<8x128xf32>
    %214 = arith.addf %15, %213 : vector<8x128xf32>
    %215 = math.tanh %214 : vector<8x128xf32>
    %cst_55 = arith.constant 1.000000e+00 : f32
    %216 = vector.broadcast %cst_55 : f32 to vector<8x128xf32>
    %217 = arith.subf %216, %210 : vector<8x128xf32>
    %218 = arith.mulf %217, %215 : vector<8x128xf32>
    %219 = arith.mulf %210, %191 : vector<8x128xf32>
    %220 = arith.addf %218, %219 : vector<8x128xf32>
    %c6 = arith.constant 6 : index
    %c0_56 = arith.constant 0 : index
    %c0_57 = arith.constant 0 : index
    %221 = vector.load %arg11[%c6, %c0_56, %c0_57] : memref<8x8x128xf32, #tpu.memory_space<vmem>>, vector<1x8x128xf32>
    %222 = vector.shape_cast %221 : vector<1x8x128xf32> to vector<8x128xf32>
    %223 = vector.shape_cast %220 : vector<8x128xf32> to vector<1x8x128xf32>
    tpu.vector_store %arg11[%c6, %c0_56, %c0_57], %223 {strides = array<i32>} : memref<8x8x128xf32, #tpu.memory_space<vmem>>, vector<1x8x128xf32>,
    %224 = arith.truncf %220 : vector<8x128xf32> to vector<8x128xbf16>
    %cst_58 = arith.constant dense<0.000000e+00> : vector<8x384xf32>
    %225 = tpu.matmul %224, %16, %cst_58 {dimension_numbers = #tpu.dot_dimension_numbers<[1], [0], [0], [1], [0, 0, 1, 1], [], []>} : vector<8x128xbf16>, vector<128x384xbf16>, vector<8x384xf32> -> vector<8x384xf32>
    %226 = vector.extract_strided_slice %225 {offsets = [0, 0], sizes = [8, 128], strides = [1, 1]} : vector<8x384xf32> to vector<8x128xf32>
    %227 = arith.addf %13, %226 : vector<8x128xf32>
    %228 = arith.negf %227 : vector<8x128xf32>
    %229 = math.exp %228 : vector<8x128xf32>
    %cst_59 = arith.constant 1.000000e+00 : f32
    %230 = vector.broadcast %cst_59 : f32 to vector<8x128xf32>
    %231 = arith.addf %230, %229 : vector<8x128xf32>
    %232 = arith.divf %230, %231 : vector<8x128xf32>
    %233 = vector.extract_strided_slice %225 {offsets = [0, 128], sizes = [8, 128], strides = [1, 1]} : vector<8x384xf32> to vector<8x128xf32>
    %234 = arith.addf %14, %233 : vector<8x128xf32>
    %235 = arith.negf %234 : vector<8x128xf32>
    %236 = math.exp %235 : vector<8x128xf32>
    %cst_60 = arith.constant 1.000000e+00 : f32
    %237 = vector.broadcast %cst_60 : f32 to vector<8x128xf32>
    %238 = arith.addf %237, %236 : vector<8x128xf32>
    %239 = arith.divf %237, %238 : vector<8x128xf32>
    %240 = vector.extract_strided_slice %225 {offsets = [0, 256], sizes = [8, 128], strides = [1, 1]} : vector<8x384xf32> to vector<8x128xf32>
    %241 = arith.addf %240, %19 : vector<8x128xf32>
    %242 = arith.mulf %232, %241 : vector<8x128xf32>
    %243 = arith.addf %15, %242 : vector<8x128xf32>
    %244 = math.tanh %243 : vector<8x128xf32>
    %cst_61 = arith.constant 1.000000e+00 : f32
    %245 = vector.broadcast %cst_61 : f32 to vector<8x128xf32>
    %246 = arith.subf %245, %239 : vector<8x128xf32>
    %247 = arith.mulf %246, %244 : vector<8x128xf32>
    %248 = arith.mulf %239, %220 : vector<8x128xf32>
    %249 = arith.addf %247, %248 : vector<8x128xf32>
    %c7 = arith.constant 7 : index
    %c0_62 = arith.constant 0 : index
    %c0_63 = arith.constant 0 : index
    %250 = vector.load %arg11[%c7, %c0_62, %c0_63] : memref<8x8x128xf32, #tpu.memory_space<vmem>>, vector<1x8x128xf32>
    %251 = vector.shape_cast %250 : vector<1x8x128xf32> to vector<8x128xf32>
    %252 = vector.shape_cast %249 : vector<8x128xf32> to vector<1x8x128xf32>
    tpu.vector_store %arg11[%c7, %c0_62, %c0_63], %252 {strides = array<i32>} : memref<8x8x128xf32, #tpu.memory_space<vmem>>, vector<1x8x128xf32>,
    %c0_64 = arith.constant 0 : index
    %c0_65 = arith.constant 0 : index
    %c0_66 = arith.constant 0 : index
    %253 = vector.load %arg11[%c0_64, %c0_65, %c0_66] : memref<8x8x128xf32, #tpu.memory_space<vmem>>, vector<8x8x128xf32>
    %254 = arith.truncf %253 : vector<8x8x128xf32> to vector<8x8x128xbf16>
    %255 = vector.shape_cast %254 : vector<8x8x128xbf16> to vector<64x128xbf16>
    %c0_67 = arith.constant 0 : index
    %c0_68 = arith.constant 0 : index
    %256 = vector.load %arg8[%c0_67, %c0_68] : memref<128x128xbf16, #tpu.memory_space<vmem>>, vector<128x128xbf16>
    %cst_69 = arith.constant dense<0.000000e+00> : vector<64x128xf32>
    %257 = tpu.matmul %255, %256, %cst_69 {dimension_numbers = #tpu.dot_dimension_numbers<[1], [0], [0], [1], [0, 0, 1, 1], [], []>} : vector<64x128xbf16>, vector<128x128xbf16>, vector<64x128xf32> -> vector<64x128xf32>
    %c0_70 = arith.constant 0 : index
    %c0_71 = arith.constant 0 : index
    %258 = vector.load %arg9[%c0_70, %c0_71] : memref<1x128xf32, #tpu.memory_space<vmem>>, vector<1x128xf32>
    %259 = vector.broadcast %258 : vector<1x128xf32> to vector<64x128xf32>
    %260 = arith.addf %257, %259 : vector<64x128xf32>
    %261 = vector.shape_cast %260 : vector<64x128xf32> to vector<8x8x128xf32>
    %c0_72 = arith.constant 0 : index
    %c0_73 = arith.constant 0 : index
    %c0_74 = arith.constant 0 : index
    %262 = vector.load %arg10[%c0_72, %c0_73, %c0_74] : memref<8x8x128xf32, #tpu.memory_space<vmem>>, vector<8x8x128xf32>
    tpu.vector_store %arg10[%c0_72, %c0_73, %c0_74], %261 {strides = array<i32>} : memref<8x8x128xf32, #tpu.memory_space<vmem>>, vector<8x8x128xf32>,
    return
  }
  func.func @transform_0(%arg0: i32) -> (i32, i32) {
    %c0_i32 = arith.constant 0 : i32
    %c0_i32_0 = arith.constant 0 : i32
    return %arg0, %c0_i32 : i32, i32
  }
  func.func @transform_1(%arg0: i32) -> (i32, i32) {
    %c0_i32 = arith.constant 0 : i32
    %c0_i32_0 = arith.constant 0 : i32
    %c0_i32_1 = arith.constant 0 : i32
    return %c0_i32, %c0_i32_0 : i32, i32
  }
  func.func @transform_2(%arg0: i32) -> (i32, i32) {
    %c0_i32 = arith.constant 0 : i32
    %c0_i32_0 = arith.constant 0 : i32
    %c0_i32_1 = arith.constant 0 : i32
    return %c0_i32, %c0_i32_0 : i32, i32
  }
  func.func @transform_3(%arg0: i32) -> (i32, i32) {
    %c0_i32 = arith.constant 0 : i32
    %c0_i32_0 = arith.constant 0 : i32
    %c0_i32_1 = arith.constant 0 : i32
    return %c0_i32, %c0_i32_0 : i32, i32
  }
  func.func @transform_4(%arg0: i32) -> (i32, i32) {
    %c0_i32 = arith.constant 0 : i32
    %c0_i32_0 = arith.constant 0 : i32
    %c0_i32_1 = arith.constant 0 : i32
    return %c0_i32, %c0_i32_0 : i32, i32
  }
  func.func @transform_5(%arg0: i32) -> (i32, i32) {
    %c0_i32 = arith.constant 0 : i32
    %c0_i32_0 = arith.constant 0 : i32
    %c0_i32_1 = arith.constant 0 : i32
    return %c0_i32, %c0_i32_0 : i32, i32
  }
  func.func @transform_6(%arg0: i32) -> (i32, i32) {
    %c0_i32 = arith.constant 0 : i32
    %c0_i32_0 = arith.constant 0 : i32
    %c0_i32_1 = arith.constant 0 : i32
    return %c0_i32, %c0_i32_0 : i32, i32
  }
  func.func @transform_7(%arg0: i32) -> (i32, i32) {
    %c0_i32 = arith.constant 0 : i32
    %c0_i32_0 = arith.constant 0 : i32
    %c0_i32_1 = arith.constant 0 : i32
    return %c0_i32, %c0_i32_0 : i32, i32
  }
  func.func @transform_8(%arg0: i32) -> (i32, i32) {
    %c0_i32 = arith.constant 0 : i32
    %c0_i32_0 = arith.constant 0 : i32
    %c0_i32_1 = arith.constant 0 : i32
    return %c0_i32, %c0_i32_0 : i32, i32
  }
  func.func @transform_9(%arg0: i32) -> (i32, i32, i32) {
    %c0_i32 = arith.constant 0 : i32
    %c0_i32_0 = arith.constant 0 : i32
    %c0_i32_1 = arith.constant 0 : i32
    return %c0_i32, %arg0, %c0_i32_0 : i32, i32, i32
  }
}

</mosaic_0001>

<bundles_post_ra>
// kernel: transformer_vae_decoder.1
= control target key start
LH: loop header
LB: loop body
LE: loop exit
PB: predicated region body
PF: predicated region fallthrough
CT: control target
= control target key end

     0   :  { %14 = vsyncpa [#allocation4], 0  ;;  %s2785_s0 = inlined_call_operand.vmem [shape: f32[8,8], index: 0, kind: input, shape index: {}]   ;;  %s2786_s1 = inlined_call_operand.vmem [shape: bf16[8,128], index: 1, kind: input, shape index: {}]   ;;  %s2787_s2 = inlined_call_operand.vmem [shape: f32[1,128], index: 2, kind: input, shape index: {}]   ;;  %s2788_s3 = inlined_call_operand.hbm [shape: bf16[128,384], index: 3, kind: input, shape index: {}]   ;;  %s2789_s4 = inlined_call_operand.vmem [shape: f32[1,384], index: 4, kind: input, shape index: {}]   ;;  %s2790_s5 = inlined_call_operand.hbm [shape: bf16[128,384], index: 5, kind: input, shape index: {}]   ;;  %s2791_s6 = inlined_call_operand.vmem [shape: f32[1,128], index: 6, kind: input, shape index: {}]   ;;  %s2792_s7 = inlined_call_operand.hbm [shape: bf16[128,128], index: 7, kind: input, shape index: {}]   ;;  %s2793_s8 = inlined_call_operand.vmem [shape: f32[1,128], index: 8, kind: input, shape index: {}]   ;;  %s2794_s9 = inlined_call_operand.vmem [shape: f32[8,8,128], index: 9, kind: output, shape index: {}]  }
   0x1   :  { %15 = vsyncpa [#allocation6], 0  ;;  %s2225_s30 = smov [#allocation5]   ;;  %s2226_s11 = smov [#allocation3]  }
   0x2   :  { %s41_s10 = sshll.u32 %s2225_s30, 4  ;;  %s27_s12 = sshll.u32 %s2226_s11, 4  ;;  %s42_s10 = int_to_ptr.vmem [resolvable:$true] %s41_s10  ;;  %s28_s12 = int_to_ptr.vmem [resolvable:$true] %s27_s12 }
   0x3   :  { %s2169_s13 = scalar_lea.vmem %s42_s10, 3072  ;;  %p2174_p1 = scmp.lt.s32.totalorder %s42_s10, %s42_s10 }
   0x4   :  { %p2170_p0 = scmp.ne.s32.totalorder %s42_s10, %s2169_s13  ;;  %p2175_p2 = scmp.lt.s32.totalorder %s2169_s13, %s2169_s13 }
   0x6   :  { %p2176_p3 = por %p2175_p2, %p2174_p1 }
   0x8   :  { %p2177_p4 = pnand %p2176_p3, %p2170_p0 }
   0xa   :  { %2180 = shalt.err (!%p2177_p4)
}
   0xb   :  { %s2227_s14 = smov 192   ;;  %s2228_s15 = smov 12  }
   0xc   :  { %47 = dma.hbm_to_vmem [thread:$0]  %s2790_s5, 3072, %s42_s10, [#allocation6], %s2227_s14, %s2227_s14, %s2228_s15  }
   0xd   :  { %s2189_s18 = scalar_lea.vmem %s28_s12, 3072  ;;  %p2194_p6 = scmp.lt.s32.totalorder %s28_s12, %s28_s12 }
   0xe   :  { %p2190_p5 = scmp.ne.s32.totalorder %s28_s12, %s2189_s18  ;;  %p2195_p7 = scmp.lt.s32.totalorder %s2189_s18, %s2189_s18 }
  0x10   :  { %p2196_p8 = por %p2195_p7, %p2194_p6 }
  0x12   :  { %p2197_p9 = pnand %p2196_p8, %p2190_p5 }
  0x14   :  { %2200 = shalt.err (!%p2197_p9)
}
  0x15   :  { %33 = dma.hbm_to_vmem [thread:$0]  %s2788_s3, 3072, %s28_s12, [#allocation4], %s2227_s14, %s2227_s14, %s2228_s15  }
  0x16   :  { %s2229_s21 = smov [#allocation7]  }
  0x17   :  { %s55_s22 = sshll.u32 %s2229_s21, 4  ;;  %s56_s22 = int_to_ptr.vmem [resolvable:$true] %s55_s22 }
  0x18   :  { %s2209_s23 = scalar_lea.vmem %s56_s22, 1024  ;;  %p2214_p11 = scmp.lt.s32.totalorder %s56_s22, %s56_s22 }
  0x19   :  { %p2210_p10 = scmp.ne.s32.totalorder %s56_s22, %s2209_s23  ;;  %p2215_p12 = scmp.lt.s32.totalorder %s2209_s23, %s2209_s23 }
  0x1b   :  { %p2216_p13 = por %p2215_p12, %p2214_p11 }
  0x1d   :  { %p2217_p0 = pnand %p2216_p13, %p2210_p10 }
  0x1f   :  { %2220 = shalt.err (!%p2217_p0)
}
  0x20   :  { %s2230_s5 = smov 64   ;;  %s2231_s24 = smov 4  }
  0x21   :  { %61 = dma.hbm_to_vmem [thread:$0]  %s2792_s7, 1024, %s56_s22, [#allocation6], %s2230_s5, %s2230_s5, %s2231_s24  }
  0x22   :  { %2221 = dma.done.wait [#allocation4], 3072  }
  0x23   :  { %2222 = vsyncadd [#allocation4], 4294964224 }
  0x24   :  { %2223 = dma.done.wait [#allocation6], 4096  }
  0x25   :  { %2224 = vsyncadd [#allocation6], 4294963200  ;;  %v2232_v0 = vmov 0.0   ;;  %vm2233_vm0 = vmmov 0   ;;  %vm88_vm1 = vcmask 1043456   ;;  %v74_v2 = vld [vmem:[%s2785_s0] sm:$0xff] }
  0x26   :  { %1773 = vmatprep.subr.bf16.mxu1 %v2232_v0  ;;  %1775 = vmatprep.mubr.msk.bf16.mxu1 %vm2233_vm0, %v2232_v0  ;;  %v76_v1 = vld [vmem:[%s2786_s1] sm:$0xf]  ;;  %v75_v4 = vpack.c.bf16 %v74_v2, %v74_v2  ;;  %v1993_v5 = vld [vmem:[#allocation3 + $0xac] ss:$12 sps:$4 sm:$0xff]   ;;  %v1995_v6 = vld [vmem:[#allocation3 + $0xa8] ss:$12 sps:$4 sm:$0xff]  }
  0x27   :  { %v90_v3 = vsel %vm88_vm1, %v76_v1, 0  ;;  %vm84_vm2 = vcmask 64512   ;;  %v2303_v7 = vld [vmem:[#allocation5 + $0xac] ss:$12 sps:$4 sm:$0xff]   ;;  %310 = vmatprep.subr.bf16.mxu0 %v1993_v5  ;;  %v1998_v8 = vld [vmem:[#allocation3 + $0x94] ss:$12 sps:$4 sm:$0xff]   ;;  %v167_v5 = vlaneseq }
  0x28   :  { %1774 = vmatpush3.bf16.msra.mxu1 %v90_v3  ;;  %311 = vmatpush1.bf16.msra.mxu0 %v1995_v6  ;;  %v2306_v9 = vld [vmem:[#allocation5 + $0xa8] ss:$12 sps:$4 sm:$0xff]   ;;  %v2001_v10 = vld [vmem:[#allocation3 + $0x90] ss:$12 sps:$4 sm:$0xff]   ;;  %v2007_v14 = vld [vmem:[#allocation3 + $0x78] ss:$12 sps:$4 sm:$0xff]  }
  0x29   :  { %558 = vmatprep.subr.bf16.mxu1 %v2303_v7  ;;  %312 = vmatprep.subr.bf16.mxu0 %v1998_v8  ;;  %v2308_v11 = vld [vmem:[#allocation5 + $0x94] ss:$12 sps:$4 sm:$0xff]   ;;  %v2004_v12 = vld [vmem:[#allocation3 + $0x7c] ss:$12 sps:$4 sm:$0xff]   ;;  %v2010_v16 = vld [vmem:[#allocation3 + $0x64] ss:$12 sps:$4 sm:$0xff]  }
  0x2a   :  { %v2311_v13 = vld [vmem:[#allocation5 + $0x90] ss:$12 sps:$4 sm:$0xff]   ;;  %v2317_v17 = vld [vmem:[#allocation5 + $0x78] ss:$12 sps:$4 sm:$0xff]   ;;  %v2013_v19 = vld [vmem:[#allocation3 + $0x60] ss:$12 sps:$4 sm:$0xff]  }
  0x2b   :  { %1776 = vmatmul.mubr.msk.bf16.vlgmr.msra.gmra.mxu1 %vm84_vm2, %v75_v4  ;;  %v2314_v15 = vld [vmem:[#allocation5 + $0x7c] ss:$12 sps:$4 sm:$0xff]   ;;  %v2320_v18 = vld [vmem:[#allocation5 + $0x64] ss:$12 sps:$4 sm:$0xff]   ;;  %v2016_v20 = vld [vmem:[#allocation3 + $0x4c] ss:$12 sps:$4 sm:$0xff]  }
  0x2c   :  { %559 = vmatpush1.bf16.msra.mxu1 %v2306_v9  ;;  %313 = vmatpush1.bf16.msra.mxu0 %v2001_v10  ;;  %v2323_v21 = vld [vmem:[#allocation5 + $0x60] ss:$12 sps:$4 sm:$0xff]   ;;  %v2019_v23 = vld [vmem:[#allocation3 + $0x48] ss:$12 sps:$4 sm:$0xff]   ;;  %v2025_v26 = vld [vmem:[#allocation3 + $0x30] ss:$12 sps:$4 sm:$0xff]  }
  0x2d   :  { %560 = vmatprep.subr.bf16.mxu1 %v2308_v11  ;;  %314 = vmatprep.subr.bf16.mxu0 %v2004_v12  ;;  %v2326_v22 = vld [vmem:[#allocation5 + $0x4c] ss:$12 sps:$4 sm:$0xff]   ;;  %v2022_v24 = vld [vmem:[#allocation3 + $0x34] ss:$12 sps:$4 sm:$0xff]   ;;  %v2028_v28 = vld [vmem:[#allocation3 + $0x1c] ss:$12 sps:$4 sm:$0xff]  }
  0x2e   :  { %v2328_v25 = vld [vmem:[#allocation5 + $0x48] ss:$12 sps:$4 sm:$0xff]   ;;  %v2334_v29 = vld [vmem:[#allocation5 + $0x30] ss:$12 sps:$4 sm:$0xff]   ;;  %v2031_v31 = vld [vmem:[#allocation3 + $0x18] ss:$12 sps:$4 sm:$0xff]  }
  0x2f   :  { %v2331_v27 = vld [vmem:[#allocation5 + $0x34] ss:$12 sps:$4 sm:$0xff]   ;;  %v2336_v30 = vld [vmem:[#allocation5 + $0x1c] ss:$12 sps:$4 sm:$0xff]   ;;  %v2034_v32 = vld [vmem:[#allocation3 + $0x4] ss:$12 sps:$4 sm:$0xff]  }
  0x30   :  { %561 = vmatpush1.bf16.msra.mxu1 %v2311_v13  ;;  %315 = vmatpush1.bf16.msra.mxu0 %v2007_v14  ;;  %v2342_v33 = vld [vmem:[#allocation5 + $0x18] ss:$12 sps:$4 sm:$0xff]   ;;  %v2037_v34 = vld [vmem:[#allocation3] ss:$12 sps:$4 sm:$0xff]   ;;  %v2234_v37 = vmov 0   ;;  %v168_v8 = vshrl.u32 %v167_v5, 7 }
  0x31   :  { %562 = vmatprep.subr.bf16.mxu1 %v2314_v15  ;;  %316 = vmatprep.subr.bf16.mxu0 %v2010_v16  ;;  %v2345_v35 = vld [vmem:[#allocation5 + $0x4] ss:$12 sps:$4 sm:$0xff]   ;;  %v2348_v36 = vld [vmem:[#allocation5] ss:$12 sps:$4 sm:$0xff]   ;;  %v2044_v48 = vld [vmem:[#allocation3 + $0x68] ss:$12 sps:$4 sm:$0xff]  }
  0x32   :  { %342 = vmatprep.mubr.bf16.mxu0 %v2234_v37  ;;  %590 = vmatprep.mubr.bf16.mxu1 %v2234_v37  ;;  %v1594_v38 = vld [vmem:[%s2787_s2] ss:$0 sm:$0xff]  ;;  %v2041_v42 = vld [vmem:[#allocation3 + $0xb0] ss:$12 sps:$4 sm:$0xff]   ;;  %v2042_v46 = vld [vmem:[#allocation3 + $0x98] ss:$12 sps:$4 sm:$0xff]  }
  0x33   :  { %v2043_v47 = vld [vmem:[#allocation3 + $0x80] ss:$12 sps:$4 sm:$0xff]   ;;  %v2045_v49 = vld [vmem:[#allocation3 + $0x50] ss:$12 sps:$4 sm:$0xff]   ;;  %v2046_v50 = vld [vmem:[#allocation3 + $0x38] ss:$12 sps:$4 sm:$0xff]  }
  0x34   :  { %563 = vmatpush1.bf16.msra.mxu1 %v2317_v17  ;;  %317 = vmatpush1.bf16.msra.mxu0 %v2013_v19  ;;  %v2047_v51 = vld [vmem:[#allocation3 + $0x20] ss:$12 sps:$4 sm:$0xff]   ;;  %v2048_v52 = vld [vmem:[#allocation3 + $0x8] ss:$12 sps:$4 sm:$0xff]   ;;  %v2385_v53 = vld [vmem:[#allocation5 + $0xb0] ss:$12 sps:$4 sm:$0xff]  }
  0x35   :  { %564 = vmatprep.subr.bf16.mxu1 %v2320_v18  ;;  %318 = vmatprep.subr.bf16.mxu0 %v2016_v20  ;;  %v2389_v54 = vld [vmem:[#allocation5 + $0x98] ss:$12 sps:$4 sm:$0xff]   ;;  %v2395_v55 = vld [vmem:[#allocation5 + $0x80] ss:$12 sps:$4 sm:$0xff]   ;;  %v2399_v56 = vld [vmem:[#allocation5 + $0x68] ss:$12 sps:$4 sm:$0xff]  }
  0x36   :  { %v2403_v57 = vld [vmem:[#allocation5 + $0x50] ss:$12 sps:$4 sm:$0xff]   ;;  %v2407_v58 = vld [vmem:[#allocation5 + $0x38] ss:$12 sps:$4 sm:$0xff]   ;;  %v2411_v59 = vld [vmem:[#allocation5 + $0x20] ss:$12 sps:$4 sm:$0xff]  }
  0x37   :  { %v2415_v60 = vld [vmem:[#allocation5 + $0x8] ss:$12 sps:$4 sm:$0xff]   ;;  %v169_v10 = vsub.s32 0, %v168_v8  ;;  %v165_v12 = vld [vmem:[%s2789_s4] sm:$0x7]  ;;  %v173_v20 = vsub.s32 1, %v168_v8 }
  0x38   :  { %565 = vmatpush1.bf16.msra.mxu1 %v2323_v21  ;;  %319 = vmatpush1.bf16.msra.mxu0 %v2019_v23 }
  0x39   :  { %566 = vmatprep.subr.bf16.mxu1 %v2326_v22  ;;  %320 = vmatprep.subr.bf16.mxu0 %v2022_v24  ;;  %v170_v14 = vrot.slane %v165_v12, %v169_v10  ;;  %v174_v24 = vrot.slane %v165_v12, %v173_v20 }
  0x3c   :  { %567 = vmatpush1.bf16.msra.mxu1 %v2328_v25  ;;  %321 = vmatpush1.bf16.msra.mxu0 %v2025_v26 }
  0x3d   :  { %568 = vmatprep.subr.bf16.mxu1 %v2331_v27  ;;  %322 = vmatprep.subr.bf16.mxu0 %v2028_v28 }
  0x40   :  { %569 = vmatpush1.bf16.msra.mxu1 %v2334_v29  ;;  %323 = vmatpush1.bf16.msra.mxu0 %v2031_v31 }
  0x41   :  { %570 = vmatprep.subr.bf16.mxu1 %v2336_v30  ;;  %324 = vmatprep.subr.bf16.mxu0 %v2034_v32 }
  0x44   :  { %571 = vmatpush1.bf16.msra.mxu1 %v2342_v33  ;;  %325 = vmatpush1.bf16.msra.mxu0 %v2037_v34 }
  0x45   :  { %1779 = vmatprep.subr.bf16.mxu0 %v2232_v0  ;;  %572 = vmatprep.subr.bf16.mxu1 %v2345_v35 }
  0x48   :  { %573 = vmatpush1.bf16.msra.mxu1 %v2348_v36 }
  0x49   :  { %663 = vmatprep.subr.bf16.mxu1 %v2303_v7 }
  0x4b   :  { %591 = vmatmul.mubr.bf16.vlgmr.msra.gmra.mxu1 %v2234_v37 }
  0x4c   :  { %664 = vmatpush1.bf16.msra.mxu1 %v2306_v9  ;;  %695 = vmatprep.mubr.bf16.mxu1 %v2234_v37 }
  0x4d   :  { %665 = vmatprep.subr.bf16.mxu1 %v2308_v11 }
  0x50   :  { %666 = vmatpush1.bf16.msra.mxu1 %v2311_v13 }
  0x51   :  { %667 = vmatprep.subr.bf16.mxu1 %v2314_v15 }
  0x54   :  { %668 = vmatpush1.bf16.msra.mxu1 %v2317_v17 }
  0x55   :  { %669 = vmatprep.subr.bf16.mxu1 %v2320_v18 }
  0x58   :  { %670 = vmatpush1.bf16.msra.mxu1 %v2323_v21 }
  0x59   :  { %671 = vmatprep.subr.bf16.mxu1 %v2326_v22 }
  0x5c   :  { %672 = vmatpush1.bf16.msra.mxu1 %v2328_v25 }
  0x5d   :  { %673 = vmatprep.subr.bf16.mxu1 %v2331_v27 }
  0x60   :  { %674 = vmatpush1.bf16.msra.mxu1 %v2334_v29 }
  0x61   :  { %675 = vmatprep.subr.bf16.mxu1 %v2336_v30 }
  0x64   :  { %676 = vmatpush1.bf16.msra.mxu1 %v2342_v33 }
  0x65   :  { %677 = vmatprep.subr.bf16.mxu1 %v2345_v35 }
  0x68   :  { %678 = vmatpush1.bf16.msra.mxu1 %v2348_v36 }
  0x69   :  { %769 = vmatprep.subr.bf16.mxu1 %v2303_v7 }
  0xeb   :  { %v126_v39 = vpop.f32.mrf.mxu1 }
  0xec   :  { %v127_v40 = vadd.f32 %v1594_v38, %v126_v39 }
  0xed   :  { %v1777_v41 = vpop.f32.mrf.mxu1 }
  0xee   :  { %v132_v43 = vpack.c.bf16 %v127_v40, %v127_v40 }
  0xef   :  { %v129_v44 = vpop.f32.mrf.mxu1 }
  0xf0   :  { %343 = vmatmul.mubr.bf16.vlgmr.msra.gmra.mxu0 %v132_v43  ;;  %v2451_v44 = vld [vmem:[%s2791_s6] ss:$0 sm:$0xff] }
  0xf1   :  { %1780 = vmatpush3.bf16.msra.mxu0 %v2041_v42  ;;  %v1778_v45 = vpop.f32.mrf.mxu1  ;;  %1795 = vmatprep.mubr.msk.bf16.mxu0 %vm2233_vm0, %v2232_v0  ;;  %v177_v42 = vsub.s32 2, %v168_v8 }
  0xf2   :  { %1781 = vmatprep.subr.bf16.mxu0 %v2232_v0 }
  0xf5   :  { %1782 = vmatpush3.bf16.msra.mxu0 %v2042_v46  ;;  %v178_v46 = vrot.slane %v165_v12, %v177_v42 }
  0xf6   :  { %1783 = vmatprep.subr.bf16.mxu0 %v2232_v0 }
  0xf9   :  { %1784 = vmatpush3.bf16.msra.mxu0 %v2043_v47 }
  0xfa   :  { %1785 = vmatprep.subr.bf16.mxu0 %v2232_v0 }
  0xfd   :  { %1786 = vmatpush3.bf16.msra.mxu0 %v2044_v48 }
  0xfe   :  { %1787 = vmatprep.subr.bf16.mxu0 %v2232_v0 }
 0x101   :  { %1788 = vmatpush3.bf16.msra.mxu0 %v2045_v49 }
 0x102   :  { %1789 = vmatprep.subr.bf16.mxu0 %v2232_v0 }
 0x105   :  { %1790 = vmatpush3.bf16.msra.mxu0 %v2046_v50 }
 0x106   :  { %1791 = vmatprep.subr.bf16.mxu0 %v2232_v0 }
 0x109   :  { %1792 = vmatpush3.bf16.msra.mxu0 %v2047_v51 }
 0x10a   :  { %1793 = vmatprep.subr.bf16.mxu0 %v2232_v0 }
 0x10b   :  { %v592_v61 = vpop.f32.mrf.mxu1 }
 0x10d   :  { %1794 = vmatpush3.bf16.msra.mxu0 %v2048_v52  ;;  %v594_v62 = vpop.f32.mrf.mxu1 }
 0x10e   :  { %1799 = vmatprep.subr.bf16.mxu0 %v2232_v0 }
 0x10f   :  { %v596_v63 = vpop.f32.mrf.mxu1 }
 0x110   :  { %1796 = vmatmul.mubr.bf16.vlgmr.msra.gmra.mxu0 %v132_v43 }
 0x111   :  { %1800 = vmatpush3.bf16.msra.mxu0 %v2385_v53  ;;  %1815 = vmatprep.mubr.msk.bf16.mxu0 %vm2233_vm0, %v2232_v0  ;;  %v597_v1 = vpop.f32.mrf.mxu1 }
 0x112   :  { %1801 = vmatprep.subr.bf16.mxu0 %v2232_v0 }
 0x115   :  { %1802 = vmatpush3.bf16.msra.mxu0 %v2389_v54 }
 0x116   :  { %1803 = vmatprep.subr.bf16.mxu0 %v2232_v0 }
 0x119   :  { %1804 = vmatpush3.bf16.msra.mxu0 %v2395_v55 }
 0x11a   :  { %1805 = vmatprep.subr.bf16.mxu0 %v2232_v0 }
 0x11d   :  { %1806 = vmatpush3.bf16.msra.mxu0 %v2399_v56 }
 0x11e   :  { %1807 = vmatprep.subr.bf16.mxu0 %v2232_v0 }
 0x121   :  { %1808 = vmatpush3.bf16.msra.mxu0 %v2403_v57 }
 0x122   :  { %1809 = vmatprep.subr.bf16.mxu0 %v2232_v0 }
 0x125   :  { %1810 = vmatpush3.bf16.msra.mxu0 %v2407_v58 }
 0x126   :  { %1811 = vmatprep.subr.bf16.mxu0 %v2232_v0 }
 0x129   :  { %1812 = vmatpush3.bf16.msra.mxu0 %v2411_v59 }
 0x12a   :  { %1813 = vmatprep.subr.bf16.mxu0 %v2232_v0 }
 0x12d   :  { %1814 = vmatpush3.bf16.msra.mxu0 %v2415_v60 }
 0x12e   :  { %1819 = vmatprep.subr.bf16.mxu0 %v2232_v0 }
 0x130   :  { %1816 = vmatmul.mubr.bf16.vlgmr.msra.gmra.mxu0 %v2234_v37 }
 0x131   :  { %1820 = vmatpush3.bf16.msra.mxu0 %v2385_v53  ;;  %1835 = vmatprep.mubr.msk.bf16.mxu0 %vm2233_vm0, %v2232_v0 }
 0x132   :  { %1821 = vmatprep.subr.bf16.mxu0 %v2232_v0 }
 0x135   :  { %1822 = vmatpush3.bf16.msra.mxu0 %v2389_v54 }
 0x136   :  { %1823 = vmatprep.subr.bf16.mxu0 %v2232_v0 }
 0x139   :  { %1824 = vmatpush3.bf16.msra.mxu0 %v2395_v55 }
 0x13a   :  { %1825 = vmatprep.subr.bf16.mxu0 %v2232_v0 }
 0x13d   :  { %1826 = vmatpush3.bf16.msra.mxu0 %v2399_v56 }
 0x13e   :  { %1827 = vmatprep.subr.bf16.mxu0 %v2232_v0 }
 0x141   :  { %1828 = vmatpush3.bf16.msra.mxu0 %v2403_v57 }
 0x142   :  { %1829 = vmatprep.subr.bf16.mxu0 %v2232_v0 }
 0x145   :  { %1830 = vmatpush3.bf16.msra.mxu0 %v2407_v58 }
 0x146   :  { %1831 = vmatprep.subr.bf16.mxu0 %v2232_v0 }
 0x149   :  { %1832 = vmatpush3.bf16.msra.mxu0 %v2411_v59 }
 0x14a   :  { %1833 = vmatprep.subr.bf16.mxu0 %v2232_v0 }
 0x14d   :  { %1834 = vmatpush3.bf16.msra.mxu0 %v2415_v60 }
 0x14e   :  { %1839 = vmatprep.subr.bf16.mxu0 %v2232_v0 }
 0x1b0   :  { %v344_v2 = vpop.f32.mrf.mxu0 }
 0x1b1   :  { %v2442_v16 = vadd.f32 %v344_v2, %v170_v14 }
 0x1b2   :  { %v346_v3 = vpop.f32.mrf.mxu0 }
 0x1b3   :  { %v639_v19 = vadd.f32 %v592_v61, %v2442_v16  ;;  %v2445_v31 = vadd.f32 %v346_v3, %v174_v24 }
 0x1b4   :  { %v348_v4 = vpop.f32.mrf.mxu0 }
 0x1b5   :  { %v1645_v23 = vmul.f32 -1.442695, %v639_v19  ;;  %v646_v38 = vadd.f32 %v594_v62, %v2445_v31 }
 0x1b6   :  { %v349_v6 = vpop.f32.mrf.mxu0 }
 0x1b7   :  { %2065 = vpow2.f32 %v1645_v23  ;;  %v1646_v39 = vmul.f32 -1.442695, %v646_v38 }
 0x1b9   :  { %2067 = vpow2.f32 %v1646_v39 }
 0x1c4   :  { %v2066_v40 = vpop.eup %2065 }
 0x1c5   :  { %v643_v41 = vadd.f32 1.0, %v2066_v40 }
 0x1c6   :  { %v2068_v43 = vpop.eup %2067 }
 0x1c7   :  { %2069 = vrcp.f32 %v643_v41  ;;  %v650_v45 = vadd.f32 1.0, %v2068_v43 }
 0x1c9   :  { %2071 = vrcp.f32 %v650_v45 }
 0x1d0   :  { %v385_v26 = vpop.f32.mrf.mxu0 }
 0x1d1   :  { %v2454_v51 = vadd.f32 %v385_v26, %v178_v46 }
 0x1d2   :  { %v1797_v28 = vpop.f32.mrf.mxu0 }
 0x1d4   :  { %v388_v32 = vpop.f32.mrf.mxu0  ;;  %v2070_v49 = vpop.eup %2069 }
 0x1d6   :  { %v1798_v34 = vpop.f32.mrf.mxu0  ;;  %v2072_v1 = vpop.eup %2071 }
 0x1d7   :  { %v657_v2 = vsub.f32 1.0, %v2072_v1  ;;  %v659_v5 = vmul.f32 0.0, %v2072_v1 }
 0x1f0   :  { %v633_v47 = vpop.f32.mrf.mxu0 }
 0x1f1   :  { %v653_v48 = vadd.f32 %v2451_v44, %v633_v47 }
 0x1f2   :  { %v1817_v50 = vpop.f32.mrf.mxu0 }
 0x1f3   :  { %v654_v52 = vmul.f32 %v2070_v49, %v653_v48 }
 0x1f4   :  { %v636_v61 = vpop.f32.mrf.mxu0 }
 0x1f5   :  { %v655_v62 = vadd.f32 %v654_v52, %v2454_v51 }
 0x1f6   :  { %v1818_v63 = vpop.f32.mrf.mxu0 }
 0x1f7   :  { %2073 = vtanh.f32 %v655_v62 }
 0x204   :  { %v2074_v3 = vpop.eup %2073 }
 0x205   :  { %v658_v4 = vmul.f32 %v2074_v3, %v657_v2 }
 0x207   :  { %v2457_v6 = vadd.f32 %v659_v5, %v658_v4 }
 0x209   :  { %v662_v8 = vpack.c.bf16 %v2457_v6, %v2457_v6 }
 0x20b   :  { %696 = vmatmul.mubr.bf16.vlgmr.msra.gmra.mxu1 %v662_v8  ;;  %1836 = vmatmul.mubr.bf16.vlgmr.msra.gmra.mxu0 %v662_v8 }
 0x20c   :  { %770 = vmatpush1.bf16.msra.mxu1 %v2306_v9  ;;  %1840 = vmatpush3.bf16.msra.mxu0 %v2385_v53 }
 0x20d   :  { %771 = vmatprep.subr.bf16.mxu1 %v2308_v11  ;;  %1841 = vmatprep.subr.bf16.mxu0 %v2232_v0 }
 0x20e   :  { %801 = vmatprep.mubr.bf16.mxu1 %v2234_v37  ;;  %1855 = vmatprep.mubr.msk.bf16.mxu0 %vm2233_vm0, %v2232_v0 }
 0x210   :  { %772 = vmatpush1.bf16.msra.mxu1 %v2311_v13  ;;  %1842 = vmatpush3.bf16.msra.mxu0 %v2389_v54 }
 0x211   :  { %773 = vmatprep.subr.bf16.mxu1 %v2314_v15  ;;  %1843 = vmatprep.subr.bf16.mxu0 %v2232_v0 }
 0x214   :  { %774 = vmatpush1.bf16.msra.mxu1 %v2317_v17  ;;  %1844 = vmatpush3.bf16.msra.mxu0 %v2395_v55 }
 0x215   :  { %775 = vmatprep.subr.bf16.mxu1 %v2320_v18  ;;  %1845 = vmatprep.subr.bf16.mxu0 %v2232_v0 }
 0x218   :  { %776 = vmatpush1.bf16.msra.mxu1 %v2323_v21  ;;  %1846 = vmatpush3.bf16.msra.mxu0 %v2399_v56 }
 0x219   :  { %777 = vmatprep.subr.bf16.mxu1 %v2326_v22  ;;  %1847 = vmatprep.subr.bf16.mxu0 %v2232_v0 }
 0x21c   :  { %778 = vmatpush1.bf16.msra.mxu1 %v2328_v25  ;;  %1848 = vmatpush3.bf16.msra.mxu0 %v2403_v57 }
 0x21d   :  { %779 = vmatprep.subr.bf16.mxu1 %v2331_v27  ;;  %1849 = vmatprep.subr.bf16.mxu0 %v2232_v0 }
 0x220   :  { %780 = vmatpush1.bf16.msra.mxu1 %v2334_v29  ;;  %1850 = vmatpush3.bf16.msra.mxu0 %v2407_v58 }
 0x221   :  { %781 = vmatprep.subr.bf16.mxu1 %v2336_v30  ;;  %1851 = vmatprep.subr.bf16.mxu0 %v2232_v0 }
 0x224   :  { %782 = vmatpush1.bf16.msra.mxu1 %v2342_v33  ;;  %1852 = vmatpush3.bf16.msra.mxu0 %v2411_v59 }
 0x225   :  { %783 = vmatprep.subr.bf16.mxu1 %v2345_v35  ;;  %1853 = vmatprep.subr.bf16.mxu0 %v2232_v0 }
 0x228   :  { %784 = vmatpush1.bf16.msra.mxu1 %v2348_v36  ;;  %1854 = vmatpush3.bf16.msra.mxu0 %v2415_v60 }
 0x229   :  { %875 = vmatprep.subr.bf16.mxu1 %v2303_v7  ;;  %1859 = vmatprep.subr.bf16.mxu0 %v2232_v0 }
 0x2cb   :  { %v697_v10 = vpop.f32.mrf.mxu1  ;;  %v738_v12 = vpop.f32.mrf.mxu0 }
 0x2cc   :  { %v744_v14 = vadd.f32 %v697_v10, %v2442_v16  ;;  %v758_v43 = vadd.f32 %v2451_v44, %v738_v12 }
 0x2cd   :  { %v699_v19 = vpop.f32.mrf.mxu1  ;;  %v1837_v20 = vpop.f32.mrf.mxu0 }
 0x2ce   :  { %v1647_v23 = vmul.f32 -1.442695, %v744_v14  ;;  %v751_v34 = vadd.f32 %v699_v19, %v2445_v31 }
 0x2cf   :  { %v701_v24 = vpop.f32.mrf.mxu1  ;;  %v741_v26 = vpop.f32.mrf.mxu0 }
 0x2d0   :  { %2075 = vpow2.f32 %v1647_v23  ;;  %v1648_v38 = vmul.f32 -1.442695, %v751_v34 }
 0x2d1   :  { %v702_v28 = vpop.f32.mrf.mxu1  ;;  %v1838_v32 = vpop.f32.mrf.mxu0 }
 0x2d2   :  { %2077 = vpow2.f32 %v1648_v38 }
 0x2dd   :  { %v2076_v39 = vpop.eup %2075 }
 0x2de   :  { %v748_v40 = vadd.f32 1.0, %v2076_v39 }
 0x2df   :  { %v2078_v41 = vpop.eup %2077 }
 0x2e0   :  { %2079 = vrcp.f32 %v748_v40  ;;  %v755_v42 = vadd.f32 1.0, %v2078_v41 }
 0x2e2   :  { %2081 = vrcp.f32 %v755_v42 }
 0x2ed   :  { %v2080_v45 = vpop.eup %2079 }
 0x2ee   :  { %v759_v46 = vmul.f32 %v2080_v45, %v758_v43 }
 0x2ef   :  { %v2082_v48 = vpop.eup %2081 }
 0x2f0   :  { %v760_v47 = vadd.f32 %v759_v46, %v2454_v51  ;;  %v762_v49 = vsub.f32 1.0, %v2082_v48  ;;  %v764_v61 = vmul.f32 %v2082_v48, %v2457_v6 }
 0x2f2   :  { %2083 = vtanh.f32 %v760_v47 }
 0x2ff   :  { %v2084_v50 = vpop.eup %2083 }
 0x300   :  { %v763_v52 = vmul.f32 %v2084_v50, %v762_v49 }
 0x302   :  { %v2501_v62 = vadd.f32 %v764_v61, %v763_v52 }
 0x304   :  { %v768_v63 = vpack.c.bf16 %v2501_v62, %v2501_v62 }
 0x306   :  { %802 = vmatmul.mubr.bf16.vlgmr.msra.gmra.mxu1 %v768_v63  ;;  %1856 = vmatmul.mubr.bf16.vlgmr.msra.gmra.mxu0 %v768_v63 }
 0x307   :  { %876 = vmatpush1.bf16.msra.mxu1 %v2306_v9  ;;  %1860 = vmatpush3.bf16.msra.mxu0 %v2385_v53 }
 0x308   :  { %877 = vmatprep.subr.bf16.mxu1 %v2308_v11  ;;  %1861 = vmatprep.subr.bf16.mxu0 %v2232_v0 }
 0x309   :  { %907 = vmatprep.mubr.bf16.mxu1 %v2234_v37  ;;  %1875 = vmatprep.mubr.msk.bf16.mxu0 %vm2233_vm0, %v2232_v0 }
 0x30b   :  { %878 = vmatpush1.bf16.msra.mxu1 %v2311_v13  ;;  %1862 = vmatpush3.bf16.msra.mxu0 %v2389_v54 }
 0x30c   :  { %879 = vmatprep.subr.bf16.mxu1 %v2314_v15  ;;  %1863 = vmatprep.subr.bf16.mxu0 %v2232_v0 }
 0x30f   :  { %880 = vmatpush1.bf16.msra.mxu1 %v2317_v17  ;;  %1864 = vmatpush3.bf16.msra.mxu0 %v2395_v55 }
 0x310   :  { %881 = vmatprep.subr.bf16.mxu1 %v2320_v18  ;;  %1865 = vmatprep.subr.bf16.mxu0 %v2232_v0 }
 0x313   :  { %882 = vmatpush1.bf16.msra.mxu1 %v2323_v21  ;;  %1866 = vmatpush3.bf16.msra.mxu0 %v2399_v56 }
 0x314   :  { %883 = vmatprep.subr.bf16.mxu1 %v2326_v22  ;;  %1867 = vmatprep.subr.bf16.mxu0 %v2232_v0 }
 0x317   :  { %884 = vmatpush1.bf16.msra.mxu1 %v2328_v25  ;;  %1868 = vmatpush3.bf16.msra.mxu0 %v2403_v57 }
 0x318   :  { %885 = vmatprep.subr.bf16.mxu1 %v2331_v27  ;;  %1869 = vmatprep.subr.bf16.mxu0 %v2232_v0 }
 0x31b   :  { %886 = vmatpush1.bf16.msra.mxu1 %v2334_v29  ;;  %1870 = vmatpush3.bf16.msra.mxu0 %v2407_v58 }
 0x31c   :  { %887 = vmatprep.subr.bf16.mxu1 %v2336_v30  ;;  %1871 = vmatprep.subr.bf16.mxu0 %v2232_v0 }
 0x31f   :  { %888 = vmatpush1.bf16.msra.mxu1 %v2342_v33  ;;  %1872 = vmatpush3.bf16.msra.mxu0 %v2411_v59 }
 0x320   :  { %889 = vmatprep.subr.bf16.mxu1 %v2345_v35  ;;  %1873 = vmatprep.subr.bf16.mxu0 %v2232_v0 }
 0x323   :  { %890 = vmatpush1.bf16.msra.mxu1 %v2348_v36  ;;  %1874 = vmatpush3.bf16.msra.mxu0 %v2415_v60 }
 0x324   :  { %981 = vmatprep.subr.bf16.mxu1 %v2303_v7  ;;  %1879 = vmatprep.subr.bf16.mxu0 %v2232_v0 }
 0x3c6   :  { %v803_v1 = vpop.f32.mrf.mxu1  ;;  %v844_v2 = vpop.f32.mrf.mxu0 }
 0x3c7   :  { %v850_v3 = vadd.f32 %v803_v1, %v2442_v16  ;;  %v864_v34 = vadd.f32 %v2451_v44, %v844_v2 }
 0x3c8   :  { %v805_v4 = vpop.f32.mrf.mxu1  ;;  %v1857_v5 = vpop.f32.mrf.mxu0 }
 0x3c9   :  { %v1649_v8 = vmul.f32 -1.442695, %v850_v3  ;;  %v857_v20 = vadd.f32 %v805_v4, %v2445_v31 }
 0x3ca   :  { %v807_v10 = vpop.f32.mrf.mxu1  ;;  %v847_v12 = vpop.f32.mrf.mxu0 }
 0x3cb   :  { %2085 = vpow2.f32 %v1649_v8  ;;  %v1650_v23 = vmul.f32 -1.442695, %v857_v20 }
 0x3cc   :  { %v808_v14 = vpop.f32.mrf.mxu1  ;;  %v1858_v19 = vpop.f32.mrf.mxu0 }
 0x3cd   :  { %2087 = vpow2.f32 %v1650_v23 }
 0x3d8   :  { %v2086_v24 = vpop.eup %2085 }
 0x3d9   :  { %v854_v26 = vadd.f32 1.0, %v2086_v24 }
 0x3da   :  { %v2088_v28 = vpop.eup %2087 }
 0x3db   :  { %2089 = vrcp.f32 %v854_v26  ;;  %v861_v32 = vadd.f32 1.0, %v2088_v28 }
 0x3dd   :  { %2091 = vrcp.f32 %v861_v32 }
 0x3e8   :  { %v2090_v38 = vpop.eup %2089 }
 0x3e9   :  { %v865_v39 = vmul.f32 %v2090_v38, %v864_v34 }
 0x3ea   :  { %v2092_v41 = vpop.eup %2091 }
 0x3eb   :  { %v866_v40 = vadd.f32 %v865_v39, %v2454_v51  ;;  %v868_v42 = vsub.f32 1.0, %v2092_v41  ;;  %v870_v46 = vmul.f32 %v2092_v41, %v2501_v62 }
 0x3ed   :  { %2093 = vtanh.f32 %v866_v40 }
 0x3fa   :  { %v2094_v43 = vpop.eup %2093 }
 0x3fb   :  { %v869_v45 = vmul.f32 %v2094_v43, %v868_v42 }
 0x3fd   :  { %v2545_v47 = vadd.f32 %v870_v46, %v869_v45 }
 0x3ff   :  { %v874_v48 = vpack.c.bf16 %v2545_v47, %v2545_v47 }
 0x401   :  { %908 = vmatmul.mubr.bf16.vlgmr.msra.gmra.mxu1 %v874_v48  ;;  %1876 = vmatmul.mubr.bf16.vlgmr.msra.gmra.mxu0 %v874_v48 }
 0x402   :  { %982 = vmatpush1.bf16.msra.mxu1 %v2306_v9  ;;  %1880 = vmatpush3.bf16.msra.mxu0 %v2385_v53 }
 0x403   :  { %983 = vmatprep.subr.bf16.mxu1 %v2308_v11  ;;  %1881 = vmatprep.subr.bf16.mxu0 %v2232_v0 }
 0x404   :  { %1013 = vmatprep.mubr.bf16.mxu1 %v2234_v37  ;;  %1895 = vmatprep.mubr.msk.bf16.mxu0 %vm2233_vm0, %v2232_v0 }
 0x406   :  { %984 = vmatpush1.bf16.msra.mxu1 %v2311_v13  ;;  %1882 = vmatpush3.bf16.msra.mxu0 %v2389_v54 }
 0x407   :  { %985 = vmatprep.subr.bf16.mxu1 %v2314_v15  ;;  %1883 = vmatprep.subr.bf16.mxu0 %v2232_v0 }
 0x40a   :  { %986 = vmatpush1.bf16.msra.mxu1 %v2317_v17  ;;  %1884 = vmatpush3.bf16.msra.mxu0 %v2395_v55 }
 0x40b   :  { %987 = vmatprep.subr.bf16.mxu1 %v2320_v18  ;;  %1885 = vmatprep.subr.bf16.mxu0 %v2232_v0 }
 0x40e   :  { %988 = vmatpush1.bf16.msra.mxu1 %v2323_v21  ;;  %1886 = vmatpush3.bf16.msra.mxu0 %v2399_v56 }
 0x40f   :  { %989 = vmatprep.subr.bf16.mxu1 %v2326_v22  ;;  %1887 = vmatprep.subr.bf16.mxu0 %v2232_v0 }
 0x412   :  { %990 = vmatpush1.bf16.msra.mxu1 %v2328_v25  ;;  %1888 = vmatpush3.bf16.msra.mxu0 %v2403_v57 }
 0x413   :  { %991 = vmatprep.subr.bf16.mxu1 %v2331_v27  ;;  %1889 = vmatprep.subr.bf16.mxu0 %v2232_v0 }
 0x416   :  { %992 = vmatpush1.bf16.msra.mxu1 %v2334_v29  ;;  %1890 = vmatpush3.bf16.msra.mxu0 %v2407_v58 }
 0x417   :  { %993 = vmatprep.subr.bf16.mxu1 %v2336_v30  ;;  %1891 = vmatprep.subr.bf16.mxu0 %v2232_v0 }
 0x41a   :  { %994 = vmatpush1.bf16.msra.mxu1 %v2342_v33  ;;  %1892 = vmatpush3.bf16.msra.mxu0 %v2411_v59 }
 0x41b   :  { %995 = vmatprep.subr.bf16.mxu1 %v2345_v35  ;;  %1893 = vmatprep.subr.bf16.mxu0 %v2232_v0 }
 0x41e   :  { %996 = vmatpush1.bf16.msra.mxu1 %v2348_v36  ;;  %1894 = vmatpush3.bf16.msra.mxu0 %v2415_v60 }
 0x41f   :  { %1087 = vmatprep.subr.bf16.mxu1 %v2303_v7  ;;  %1899 = vmatprep.subr.bf16.mxu0 %v2232_v0 }
 0x4c1   :  { %v909_v49 = vpop.f32.mrf.mxu1  ;;  %v950_v50 = vpop.f32.mrf.mxu0 }
 0x4c2   :  { %v956_v52 = vadd.f32 %v909_v49, %v2442_v16  ;;  %v970_v20 = vadd.f32 %v2451_v44, %v950_v50 }
 0x4c3   :  { %v911_v61 = vpop.f32.mrf.mxu1  ;;  %v1877_v63 = vpop.f32.mrf.mxu0 }
 0x4c4   :  { %v1651_v1 = vmul.f32 -1.442695, %v956_v52  ;;  %v963_v8 = vadd.f32 %v911_v61, %v2445_v31 }
 0x4c5   :  { %v913_v2 = vpop.f32.mrf.mxu1  ;;  %v953_v3 = vpop.f32.mrf.mxu0 }
 0x4c6   :  { %2095 = vpow2.f32 %v1651_v1  ;;  %v1652_v10 = vmul.f32 -1.442695, %v963_v8 }
 0x4c7   :  { %v914_v4 = vpop.f32.mrf.mxu1  ;;  %v1878_v5 = vpop.f32.mrf.mxu0 }
 0x4c8   :  { %2097 = vpow2.f32 %v1652_v10  ;;  %v2639_v10 = vld [vmem:[#allocation5 + $0xa8] ss:$12 sps:$4 sm:$0xff]  }
 0x4d3   :  { %v2096_v12 = vpop.eup %2095 }
 0x4d4   :  { %v960_v7 = vadd.f32 1.0, %v2096_v12  ;;  %v2643_v12 = vld [vmem:[#allocation5 + $0x94] ss:$12 sps:$4 sm:$0xff]  }
 0x4d5   :  { %v2098_v14 = vpop.eup %2097 }
 0x4d6   :  { %2099 = vrcp.f32 %v960_v7  ;;  %v967_v19 = vadd.f32 1.0, %v2098_v14  ;;  %v2650_v7 = vld [vmem:[#allocation5 + $0x90] ss:$12 sps:$4 sm:$0xff]  }
 0x4d7   :  { %v2654_v14 = vld [vmem:[#allocation5 + $0x7c] ss:$12 sps:$4 sm:$0xff]  }
 0x4d8   :  { %2101 = vrcp.f32 %v967_v19  ;;  %v2658_v19 = vld [vmem:[#allocation5 + $0x78] ss:$12 sps:$4 sm:$0xff]  }
 0x4e3   :  { %v2100_v23 = vpop.eup %2099 }
 0x4e4   :  { %v971_v24 = vmul.f32 %v2100_v23, %v970_v20  ;;  %v2662_v20 = vld [vmem:[#allocation5 + $0x64] ss:$12 sps:$4 sm:$0xff]   ;;  %v2666_v23 = vld [vmem:[#allocation5 + $0x60] ss:$12 sps:$4 sm:$0xff]  }
 0x4e5   :  { %v2102_v28 = vpop.eup %2101 }
 0x4e6   :  { %v972_v26 = vadd.f32 %v971_v24, %v2454_v51  ;;  %v974_v32 = vsub.f32 1.0, %v2102_v28  ;;  %v976_v39 = vmul.f32 %v2102_v28, %v2545_v47  ;;  %v2670_v24 = vld [vmem:[#allocation5 + $0x4c] ss:$12 sps:$4 sm:$0xff]   ;;  %v2678_v28 = vld [vmem:[#allocation5 + $0x34] ss:$12 sps:$4 sm:$0xff]  }
 0x4e8   :  { %2103 = vtanh.f32 %v972_v26  ;;  %v2674_v26 = vld [vmem:[#allocation5 + $0x48] ss:$12 sps:$4 sm:$0xff]  }
 0x4f5   :  { %v2104_v34 = vpop.eup %2103 }
 0x4f6   :  { %v975_v38 = vmul.f32 %v2104_v34, %v974_v32  ;;  %v2682_v32 = vld [vmem:[#allocation5 + $0x30] ss:$12 sps:$4 sm:$0xff]  }
 0x4f7   :  { %v2686_v34 = vld [vmem:[#allocation5 + $0x1c] ss:$12 sps:$4 sm:$0xff]  }
 0x4f8   :  { %v2589_v40 = vadd.f32 %v976_v39, %v975_v38 }
 0x4fa   :  { %v980_v41 = vpack.c.bf16 %v2589_v40, %v2589_v40 }
 0x4fc   :  { %1014 = vmatmul.mubr.bf16.vlgmr.msra.gmra.mxu1 %v980_v41  ;;  %1896 = vmatmul.mubr.bf16.vlgmr.msra.gmra.mxu0 %v980_v41 }
 0x4fd   :  { %1088 = vmatpush1.bf16.msra.mxu1 %v2306_v9  ;;  %1900 = vmatpush3.bf16.msra.mxu0 %v2385_v53  ;;  %v2626_v9 = vld [vmem:[#allocation5 + $0xac] ss:$12 sps:$4 sm:$0xff]  }
 0x4fe   :  { %1089 = vmatprep.subr.bf16.mxu1 %v2308_v11  ;;  %1901 = vmatprep.subr.bf16.mxu0 %v2232_v0 }
 0x4ff   :  { %1119 = vmatprep.mubr.bf16.mxu1 %v2234_v37  ;;  %1915 = vmatprep.mubr.msk.bf16.mxu0 %vm2233_vm0, %v2232_v0 }
 0x501   :  { %1090 = vmatpush1.bf16.msra.mxu1 %v2311_v13  ;;  %1902 = vmatpush3.bf16.msra.mxu0 %v2389_v54 }
 0x502   :  { %1091 = vmatprep.subr.bf16.mxu1 %v2314_v15  ;;  %1903 = vmatprep.subr.bf16.mxu0 %v2232_v0 }
 0x505   :  { %1092 = vmatpush1.bf16.msra.mxu1 %v2317_v17  ;;  %1904 = vmatpush3.bf16.msra.mxu0 %v2395_v55 }
 0x506   :  { %1093 = vmatprep.subr.bf16.mxu1 %v2320_v18  ;;  %1905 = vmatprep.subr.bf16.mxu0 %v2232_v0 }
 0x509   :  { %1094 = vmatpush1.bf16.msra.mxu1 %v2323_v21  ;;  %1906 = vmatpush3.bf16.msra.mxu0 %v2399_v56 }
 0x50a   :  { %1095 = vmatprep.subr.bf16.mxu1 %v2326_v22  ;;  %1907 = vmatprep.subr.bf16.mxu0 %v2232_v0 }
 0x50d   :  { %1096 = vmatpush1.bf16.msra.mxu1 %v2328_v25  ;;  %1908 = vmatpush3.bf16.msra.mxu0 %v2403_v57 }
 0x50e   :  { %1097 = vmatprep.subr.bf16.mxu1 %v2331_v27  ;;  %1909 = vmatprep.subr.bf16.mxu0 %v2232_v0 }
 0x511   :  { %1098 = vmatpush1.bf16.msra.mxu1 %v2334_v29  ;;  %1910 = vmatpush3.bf16.msra.mxu0 %v2407_v58 }
 0x512   :  { %1099 = vmatprep.subr.bf16.mxu1 %v2336_v30  ;;  %1911 = vmatprep.subr.bf16.mxu0 %v2232_v0 }
 0x515   :  { %1100 = vmatpush1.bf16.msra.mxu1 %v2342_v33  ;;  %1912 = vmatpush3.bf16.msra.mxu0 %v2411_v59 }
 0x516   :  { %1101 = vmatprep.subr.bf16.mxu1 %v2345_v35  ;;  %1913 = vmatprep.subr.bf16.mxu0 %v2232_v0 }
 0x519   :  { %1102 = vmatpush1.bf16.msra.mxu1 %v2348_v36  ;;  %1914 = vmatpush3.bf16.msra.mxu0 %v2415_v60 }
 0x51a   :  { %1193 = vmatprep.subr.bf16.mxu1 %v2626_v9  ;;  %1919 = vmatprep.subr.bf16.mxu0 %v2232_v0 }
 0x5bc   :  { %v1015_v11 = vpop.f32.mrf.mxu1  ;;  %v1056_v13 = vpop.f32.mrf.mxu0 }
 0x5bd   :  { %v1062_v15 = vadd.f32 %v1015_v11, %v2442_v16  ;;  %v1076_v49 = vadd.f32 %v2451_v44, %v1056_v13 }
 0x5be   :  { %v1017_v17 = vpop.f32.mrf.mxu1  ;;  %v1897_v18 = vpop.f32.mrf.mxu0 }
 0x5bf   :  { %v1653_v21 = vmul.f32 -1.442695, %v1062_v15  ;;  %v1069_v30 = vadd.f32 %v1017_v17, %v2445_v31 }
 0x5c0   :  { %v1019_v22 = vpop.f32.mrf.mxu1  ;;  %v1059_v25 = vpop.f32.mrf.mxu0 }
 0x5c1   :  { %2105 = vpow2.f32 %v1653_v21  ;;  %v1654_v42 = vmul.f32 -1.442695, %v1069_v30 }
 0x5c2   :  { %v1020_v27 = vpop.f32.mrf.mxu1  ;;  %v1898_v29 = vpop.f32.mrf.mxu0 }
 0x5c3   :  { %2107 = vpow2.f32 %v1654_v42 }
 0x5ce   :  { %v2106_v43 = vpop.eup %2105 }
 0x5cf   :  { %v1066_v45 = vadd.f32 1.0, %v2106_v43 }
 0x5d0   :  { %v2108_v46 = vpop.eup %2107 }
 0x5d1   :  { %2109 = vrcp.f32 %v1066_v45  ;;  %v1073_v48 = vadd.f32 1.0, %v2108_v46 }
 0x5d3   :  { %2111 = vrcp.f32 %v1073_v48 }
 0x5de   :  { %v2110_v50 = vpop.eup %2109 }
 0x5df   :  { %v1077_v52 = vmul.f32 %v2110_v50, %v1076_v49 }
 0x5e0   :  { %v2112_v63 = vpop.eup %2111 }
 0x5e1   :  { %v1078_v61 = vadd.f32 %v1077_v52, %v2454_v51  ;;  %v1080_v1 = vsub.f32 1.0, %v2112_v63  ;;  %v1082_v4 = vmul.f32 %v2112_v63, %v2589_v40 }
 0x5e3   :  { %2113 = vtanh.f32 %v1078_v61 }
 0x5f0   :  { %v2114_v2 = vpop.eup %2113 }
 0x5f1   :  { %v1081_v3 = vmul.f32 %v2114_v2, %v1080_v1 }
 0x5f3   :  { %v2635_v5 = vadd.f32 %v1082_v4, %v1081_v3 }
 0x5f5   :  { %v1086_v8 = vpack.c.bf16 %v2635_v5, %v2635_v5 }
 0x5f7   :  { %1120 = vmatmul.mubr.bf16.vlgmr.msra.gmra.mxu1 %v1086_v8  ;;  %1916 = vmatmul.mubr.bf16.vlgmr.msra.gmra.mxu0 %v1086_v8 }
 0x5f8   :  { %1194 = vmatpush1.bf16.msra.mxu1 %v2639_v10  ;;  %1920 = vmatpush3.bf16.msra.mxu0 %v2385_v53 }
 0x5f9   :  { %1195 = vmatprep.subr.bf16.mxu1 %v2643_v12  ;;  %1921 = vmatprep.subr.bf16.mxu0 %v2232_v0 }
 0x5fa   :  { %1225 = vmatprep.mubr.bf16.mxu1 %v2234_v37  ;;  %1935 = vmatprep.mubr.msk.bf16.mxu0 %vm2233_vm0, %v2232_v0 }
 0x5fc   :  { %1196 = vmatpush1.bf16.msra.mxu1 %v2650_v7  ;;  %1922 = vmatpush3.bf16.msra.mxu0 %v2389_v54 }
 0x5fd   :  { %1197 = vmatprep.subr.bf16.mxu1 %v2654_v14  ;;  %1923 = vmatprep.subr.bf16.mxu0 %v2232_v0 }
 0x600   :  { %1198 = vmatpush1.bf16.msra.mxu1 %v2658_v19  ;;  %1924 = vmatpush3.bf16.msra.mxu0 %v2395_v55 }
 0x601   :  { %1199 = vmatprep.subr.bf16.mxu1 %v2662_v20  ;;  %1925 = vmatprep.subr.bf16.mxu0 %v2232_v0 }
 0x604   :  { %1200 = vmatpush1.bf16.msra.mxu1 %v2666_v23  ;;  %1926 = vmatpush3.bf16.msra.mxu0 %v2399_v56 }
 0x605   :  { %1201 = vmatprep.subr.bf16.mxu1 %v2670_v24  ;;  %1927 = vmatprep.subr.bf16.mxu0 %v2232_v0 }
 0x608   :  { %1202 = vmatpush1.bf16.msra.mxu1 %v2674_v26  ;;  %1928 = vmatpush3.bf16.msra.mxu0 %v2403_v57 }
 0x609   :  { %1203 = vmatprep.subr.bf16.mxu1 %v2678_v28  ;;  %1929 = vmatprep.subr.bf16.mxu0 %v2232_v0 }
 0x60c   :  { %1204 = vmatpush1.bf16.msra.mxu1 %v2682_v32  ;;  %1930 = vmatpush3.bf16.msra.mxu0 %v2407_v58 }
 0x60d   :  { %1205 = vmatprep.subr.bf16.mxu1 %v2686_v34  ;;  %1931 = vmatprep.subr.bf16.mxu0 %v2232_v0 }
 0x610   :  { %1206 = vmatpush1.bf16.msra.mxu1 %v2342_v33  ;;  %1932 = vmatpush3.bf16.msra.mxu0 %v2411_v59 }
 0x611   :  { %1207 = vmatprep.subr.bf16.mxu1 %v2345_v35  ;;  %1933 = vmatprep.subr.bf16.mxu0 %v2232_v0 }
 0x614   :  { %1208 = vmatpush1.bf16.msra.mxu1 %v2348_v36  ;;  %1934 = vmatpush3.bf16.msra.mxu0 %v2415_v60 }
 0x615   :  { %1299 = vmatprep.subr.bf16.mxu1 %v2626_v9  ;;  %1939 = vmatprep.subr.bf16.mxu0 %v2232_v0 }
 0x6b7   :  { %v1121_v38 = vpop.f32.mrf.mxu1  ;;  %v1162_v39 = vpop.f32.mrf.mxu0 }
 0x6b8   :  { %v1168_v41 = vadd.f32 %v1121_v38, %v2442_v16  ;;  %v1182_v29 = vadd.f32 %v2451_v44, %v1162_v39 }
 0x6b9   :  { %v1123_v11 = vpop.f32.mrf.mxu1  ;;  %v1917_v33 = vpop.f32.mrf.mxu0 }
 0x6ba   :  { %v1655_v13 = vmul.f32 -1.442695, %v1168_v41  ;;  %v1175_v36 = vadd.f32 %v1123_v11, %v2445_v31  ;;  %v2058_v11 = vld [vmem:[#allocation7 + $0x30] sm:$0xff]   ;;  %v1674_v33 = vpack.c.bf16 %v2501_v62, %v2457_v6  ;;  %v2064_v6 = vld [vmem:[#allocation7] sm:$0xff]   ;;  %v1675_v62 = vpack.c.bf16 %v2589_v40, %v2545_v47 }
 0x6bb   :  { %v1125_v15 = vpop.f32.mrf.mxu1  ;;  %v1165_v17 = vpop.f32.mrf.mxu0 }
 0x6bc   :  { %2115 = vpow2.f32 %v1655_v13  ;;  %v1656_v21 = vmul.f32 -1.442695, %v1175_v36  ;;  %v2059_v13 = vld [vmem:[#allocation7 + $0x28] sm:$0xff]   ;;  %v2060_v15 = vld [vmem:[#allocation7 + $0x20] sm:$0xff]   ;;  %v2061_v17 = vld [vmem:[#allocation7 + $0x18] sm:$0xff]  }
 0x6bd   :  { %v1126_v35 = vpop.f32.mrf.mxu1  ;;  %v1918_v18 = vpop.f32.mrf.mxu0 }
 0x6be   :  { %2117 = vpow2.f32 %v1656_v21  ;;  %v2062_v35 = vld [vmem:[#allocation7 + $0x10] sm:$0xff]   ;;  %v2063_v18 = vld [vmem:[#allocation7 + $0x8] sm:$0xff]  }
 0x6c9   :  { %v2116_v22 = vpop.eup %2115 }
 0x6ca   :  { %v1172_v9 = vadd.f32 1.0, %v2116_v22 }
 0x6cb   :  { %v2118_v25 = vpop.eup %2117 }
 0x6cc   :  { %2119 = vrcp.f32 %v1172_v9  ;;  %v1179_v27 = vadd.f32 1.0, %v2118_v25 }
 0x6ce   :  { %2121 = vrcp.f32 %v1179_v27 }
 0x6d9   :  { %v2120_v30 = vpop.eup %2119 }
 0x6da   :  { %v1183_v42 = vmul.f32 %v2120_v30, %v1182_v29 }
 0x6db   :  { %v2122_v45 = vpop.eup %2121 }
 0x6dc   :  { %v1184_v43 = vadd.f32 %v1183_v42, %v2454_v51  ;;  %v1186_v46 = vsub.f32 1.0, %v2122_v45  ;;  %v1188_v50 = vmul.f32 %v2122_v45, %v2635_v5 }
 0x6de   :  { %2123 = vtanh.f32 %v1184_v43 }
 0x6eb   :  { %v2124_v48 = vpop.eup %2123 }
 0x6ec   :  { %v1187_v49 = vmul.f32 %v2124_v48, %v1186_v46 }
 0x6ee   :  { %v2703_v52 = vadd.f32 %v1188_v50, %v1187_v49 }
 0x6f0   :  { %v1192_v61 = vpack.c.bf16 %v2703_v52, %v2703_v52  ;;  %v1676_v36 = vpack.c.bf16 %v2703_v52, %v2635_v5 }
 0x6f2   :  { %1226 = vmatmul.mubr.bf16.vlgmr.msra.gmra.mxu1 %v1192_v61  ;;  %1936 = vmatmul.mubr.bf16.vlgmr.msra.gmra.mxu0 %v1192_v61 }
 0x6f3   :  { %1300 = vmatpush1.bf16.msra.mxu1 %v2639_v10  ;;  %1940 = vmatpush3.bf16.msra.mxu0 %v2385_v53  ;;  %v2159_v53 = vld [vmem:[#allocation5 + $0x4] ss:$12 sps:$4 sm:$0xff]  }
 0x6f4   :  { %1301 = vmatprep.subr.bf16.mxu1 %v2643_v12  ;;  %1941 = vmatprep.subr.bf16.mxu0 %v2232_v0 }
 0x6f5   :  { %1331 = vmatprep.mubr.bf16.mxu1 %v2234_v37  ;;  %1955 = vmatprep.mubr.msk.bf16.mxu0 %vm2233_vm0, %v2232_v0  ;;  %v2158_v37 = vld [vmem:[#allocation5 + $0x18] ss:$12 sps:$4 sm:$0xff]  }
 0x6f7   :  { %1302 = vmatpush1.bf16.msra.mxu1 %v2650_v7  ;;  %1942 = vmatpush3.bf16.msra.mxu0 %v2389_v54  ;;  %v2160_v54 = vld [vmem:[#allocation5] ss:$12 sps:$4 sm:$0xff]  }
 0x6f8   :  { %1303 = vmatprep.subr.bf16.mxu1 %v2654_v14  ;;  %1943 = vmatprep.subr.bf16.mxu0 %v2232_v0 }
 0x6fb   :  { %1304 = vmatpush1.bf16.msra.mxu1 %v2658_v19  ;;  %1944 = vmatpush3.bf16.msra.mxu0 %v2395_v55  ;;  %v2057_v55 = vld [vmem:[#allocation7 + $0x38] sm:$0xff]  }
 0x6fc   :  { %1305 = vmatprep.subr.bf16.mxu1 %v2662_v20  ;;  %1945 = vmatprep.subr.bf16.mxu0 %v2232_v0 }
 0x6ff   :  { %1306 = vmatpush1.bf16.msra.mxu1 %v2666_v23  ;;  %1946 = vmatpush3.bf16.msra.mxu0 %v2399_v56 }
 0x700   :  { %1307 = vmatprep.subr.bf16.mxu1 %v2670_v24  ;;  %1947 = vmatprep.subr.bf16.mxu0 %v2232_v0 }
 0x703   :  { %1308 = vmatpush1.bf16.msra.mxu1 %v2674_v26  ;;  %1948 = vmatpush3.bf16.msra.mxu0 %v2403_v57 }
 0x704   :  { %1309 = vmatprep.subr.bf16.mxu1 %v2678_v28  ;;  %1949 = vmatprep.subr.bf16.mxu0 %v2232_v0 }
 0x707   :  { %1310 = vmatpush1.bf16.msra.mxu1 %v2682_v32  ;;  %1950 = vmatpush3.bf16.msra.mxu0 %v2407_v58 }
 0x708   :  { %1311 = vmatprep.subr.bf16.mxu1 %v2686_v34  ;;  %1951 = vmatprep.subr.bf16.mxu0 %v2232_v0 }
 0x70b   :  { %1312 = vmatpush1.bf16.msra.mxu1 %v2158_v37  ;;  %1952 = vmatpush3.bf16.msra.mxu0 %v2411_v59 }
 0x70c   :  { %1313 = vmatprep.subr.bf16.mxu1 %v2159_v53  ;;  %1953 = vmatprep.subr.bf16.mxu0 %v2232_v0 }
 0x70f   :  { %1314 = vmatpush1.bf16.msra.mxu1 %v2160_v54  ;;  %1954 = vmatpush3.bf16.msra.mxu0 %v2415_v60 }
 0x710   :  { %1959 = vmatprep.subr.bf16.mxu1 %v2057_v55 }
 0x7b2   :  { %v1227_v56 = vpop.f32.mrf.mxu1  ;;  %v1268_v57 = vpop.f32.mrf.mxu0 }
 0x7b3   :  { %v1274_v58 = vadd.f32 %v1227_v56, %v2442_v16  ;;  %v1288_v19 = vadd.f32 %v2451_v44, %v1268_v57 }
 0x7b4   :  { %v1229_v63 = vpop.f32.mrf.mxu1  ;;  %v1937_v1 = vpop.f32.mrf.mxu0 }
 0x7b5   :  { %v1657_v2 = vmul.f32 -1.442695, %v1274_v58  ;;  %v1281_v0 = vadd.f32 %v1229_v63, %v2445_v31 }
 0x7b6   :  { %v1231_v3 = vpop.f32.mrf.mxu1  ;;  %v1271_v4 = vpop.f32.mrf.mxu0 }
 0x7b7   :  { %2125 = vpow2.f32 %v1657_v2  ;;  %v1658_v10 = vmul.f32 -1.442695, %v1281_v0 }
 0x7b8   :  { %v1232_v59 = vpop.f32.mrf.mxu1  ;;  %v1938_v8 = vpop.f32.mrf.mxu0 }
 0x7b9   :  { %2127 = vpow2.f32 %v1658_v10 }
 0x7c4   :  { %v2126_v12 = vpop.eup %2125 }
 0x7c5   :  { %v1278_v60 = vadd.f32 1.0, %v2126_v12 }
 0x7c6   :  { %v2128_v7 = vpop.eup %2127 }
 0x7c7   :  { %2129 = vrcp.f32 %v1278_v60  ;;  %v1285_v14 = vadd.f32 1.0, %v2128_v7 }
 0x7c9   :  { %2131 = vrcp.f32 %v1285_v14 }
 0x7d4   :  { %v2130_v20 = vpop.eup %2129 }
 0x7d5   :  { %v1289_v23 = vmul.f32 %v2130_v20, %v1288_v19 }
 0x7d6   :  { %v2132_v26 = vpop.eup %2131 }
 0x7d7   :  { %v1290_v24 = vadd.f32 %v1289_v23, %v2454_v51  ;;  %v1292_v28 = vsub.f32 1.0, %v2132_v26  ;;  %v1294_v38 = vmul.f32 %v2132_v26, %v2703_v52 }
 0x7d9   :  { %2133 = vtanh.f32 %v1290_v24 }
 0x7e6   :  { %v2134_v32 = vpop.eup %2133 }
 0x7e7   :  { %v1293_v34 = vmul.f32 %v2134_v32, %v1292_v28 }
 0x7e9   :  { %v2742_v39 = vadd.f32 %v1294_v38, %v1293_v34 }
 0x7eb   :  { %v1298_v41 = vpack.c.bf16 %v2742_v39, %v2742_v39 }
 0x7ed   :  { %1332 = vmatmul.mubr.bf16.vlgmr.msra.gmra.mxu1 %v1298_v41  ;;  %1956 = vmatmul.mubr.bf16.vlgmr.msra.gmra.mxu0 %v1298_v41 }
 0x7ee   :  { %1960 = vmatpush3.bf16.msra.mxu1 %v2057_v55  ;;  %1975 = vmatprep.mubr.bf16.mxu1 %v1674_v33 }
 0x7ef   :  { %1961 = vmatprep.subr.bf16.mxu1 %v2058_v11 }
 0x7f2   :  { %1962 = vmatpush3.bf16.msra.mxu1 %v2058_v11 }
 0x7f3   :  { %1963 = vmatprep.subr.bf16.mxu1 %v2059_v13 }
 0x7f6   :  { %1964 = vmatpush3.bf16.msra.mxu1 %v2059_v13 }
 0x7f7   :  { %1965 = vmatprep.subr.bf16.mxu1 %v2060_v15 }
 0x7fa   :  { %1966 = vmatpush3.bf16.msra.mxu1 %v2060_v15 }
 0x7fb   :  { %1967 = vmatprep.subr.bf16.mxu1 %v2061_v17 }
 0x7fe   :  { %1968 = vmatpush3.bf16.msra.mxu1 %v2061_v17 }
 0x7ff   :  { %1969 = vmatprep.subr.bf16.mxu1 %v2062_v35 }
 0x802   :  { %1970 = vmatpush3.bf16.msra.mxu1 %v2062_v35 }
 0x803   :  { %1971 = vmatprep.subr.bf16.mxu1 %v2063_v18 }
 0x806   :  { %1972 = vmatpush3.bf16.msra.mxu1 %v2063_v18 }
 0x807   :  { %1973 = vmatprep.subr.bf16.mxu1 %v2064_v6 }
 0x80a   :  { %1974 = vmatpush3.bf16.msra.mxu1 %v2064_v6 }
 0x80d   :  { %1976 = vmatmul.mubr.bf16.vlgmr.msra.gmra.mxu1 %v1675_v62 }
 0x80e   :  { %1979 = vmatprep.mubr.bf16.mxu1 %v1676_v36 }
 0x8ad   :  { %v1333_v21 = vpop.f32.mrf.mxu1  ;;  %v1374_v22 = vpop.f32.mrf.mxu0 }
 0x8ae   :  { %v1380_v9 = vadd.f32 %v1333_v21, %v2442_v16  ;;  %v1661_v16 = vld [vmem:[%s2793_s8] ss:$0 sm:$0xff]  ;;  %v1394_v52 = vadd.f32 %v2451_v44, %v1374_v22 }
 0x8af   :  { %v1335_v25 = vpop.f32.mrf.mxu1  ;;  %v1957_v27 = vpop.f32.mrf.mxu0 }
 0x8b0   :  { %v1659_v29 = vmul.f32 -1.442695, %v1380_v9  ;;  %v1387_v46 = vadd.f32 %v1335_v25, %v2445_v31 }
 0x8b1   :  { %v1337_v30 = vpop.f32.mrf.mxu1  ;;  %v1377_v42 = vpop.f32.mrf.mxu0 }
 0x8b2   :  { %2135 = vpow2.f32 %v1659_v29  ;;  %v1660_v47 = vmul.f32 -1.442695, %v1387_v46 }
 0x8b3   :  { %v1338_v43 = vpop.f32.mrf.mxu1  ;;  %v1958_v45 = vpop.f32.mrf.mxu0 }
 0x8b4   :  { %2137 = vpow2.f32 %v1660_v47 }
 0x8bf   :  { %v2136_v40 = vpop.eup %2135 }
 0x8c0   :  { %v1384_v5 = vadd.f32 1.0, %v2136_v40 }
 0x8c1   :  { %v2138_v48 = vpop.eup %2137 }
 0x8c2   :  { %2139 = vrcp.f32 %v1384_v5  ;;  %v1391_v49 = vadd.f32 1.0, %v2138_v48 }
 0x8c4   :  { %2141 = vrcp.f32 %v1391_v49 }
 0x8cd   :  { %v1977_v50 = vpop.f32.mrf.mxu1 }
 0x8ce   :  { %v1558_v61 = vadd.f32 %v1977_v50, %v1661_v16 }
 0x8cf   :  { %v2140_v37 = vpop.eup %2139  ;;  %v1549_v53 = vpop.f32.mrf.mxu1 }
 0x8d0   :  { %v1395_v54 = vmul.f32 %v2140_v37, %v1394_v52  ;;  %1582 = vst [vmem:[%s2794_s9 + $0x10] sm:$0xff] %v1558_v61  ;;  %v1550_v31 = vadd.f32 %v1661_v16, %v1549_v53 }
 0x8d1   :  { %v1978_v55 = vpop.f32.mrf.mxu1  ;;  %v2142_v63 = vpop.eup %2141 }
 0x8d2   :  { %v1396_v56 = vadd.f32 %v1395_v54, %v2454_v51  ;;  %1580 = vst [vmem:[%s2794_s9] sm:$0xff] %v1550_v31  ;;  %v1561_v57 = vadd.f32 %v1978_v55, %v1661_v16  ;;  %v1398_v1 = vsub.f32 1.0, %v2142_v63  ;;  %v1400_v3 = vmul.f32 %v2142_v63, %v2742_v39 }
 0x8d3   :  { %v1552_v58 = vpop.f32.mrf.mxu1 }
 0x8d4   :  { %2143 = vtanh.f32 %v1396_v56  ;;  %1583 = vst [vmem:[%s2794_s9 + $0x18] sm:$0xff] %v1561_v57  ;;  %v1553_v44 = vadd.f32 %v1661_v16, %v1552_v58 }
 0x8d6   :  { %1581 = vst [vmem:[%s2794_s9 + $0x8] sm:$0xff] %v1553_v44 }
 0x8e1   :  { %v2144_v2 = vpop.eup %2143 }
 0x8e2   :  { %v1399_v51 = vmul.f32 %v2144_v2, %v1398_v1 }
 0x8e4   :  { %v1401_v4 = vadd.f32 %v1400_v3, %v1399_v51 }
 0x8e6   :  { %v1677_v59 = vpack.c.bf16 %v1401_v4, %v2742_v39 }
 0x8e8   :  { %1980 = vmatmul.mubr.bf16.gmra.mxu1 %v1677_v59 }
 0x9a8   :  { %v1981_v8 = vpop.f32.mrf.mxu1 }
 0x9a9   :  { %v1574_v0 = vadd.f32 %v1981_v8, %v1661_v16 }
 0x9aa   :  { %v1565_v10 = vpop.f32.mrf.mxu1 }
 0x9ab   :  { %1586 = vst [vmem:[%s2794_s9 + $0x30] sm:$0xff] %v1574_v0  ;;  %v1566_v12 = vadd.f32 %v1661_v16, %v1565_v10 }
 0x9ac   :  { %v1982_v60 = vpop.f32.mrf.mxu1 }
 0x9ad   :  { %1584 = vst [vmem:[%s2794_s9 + $0x20] sm:$0xff] %v1566_v12  ;;  %v1577_v7 = vadd.f32 %v1982_v60, %v1661_v16 }
 0x9ae   :  { %v1568_v14 = vpop.f32.mrf.mxu1 }
 0x9af   :  { %1587 = vst [vmem:[%s2794_s9 + $0x38] sm:$0xff] %v1577_v7  ;;  %v1569_v19 = vadd.f32 %v1661_v16, %v1568_v14 }
 0x9b1   :  { %1585 = vst [vmem:[%s2794_s9 + $0x28] sm:$0xff] %v1569_v19 }
 0x9b2   :  { %1592 = vsyncpa [#allocation4], 1 }
 0x9b3   :  { %1593 = vsyncpa [#allocation6], 1 }

</bundles_post_ra>
